<compile_context>
chip_gen: v6e
topology: v6e:2x2x1
jax: 0.10.0
libtpu: 0.0.40
codegen_flags: <defaults>
</compile_context>

<pallas_src>
import functools

import jax
import jax.numpy as jnp
from jax.experimental import pallas as pl
from jax.experimental.pallas import tpu as pltpu

DROPOUT = 0.2
N_EMBD = 384


def _round_up(x, m):
    return ((x + m - 1) // m) * m


def _ffn_kernel(seed_ref, x_ref, w1_ref, b1_ref, w2_ref, b2_ref, o_ref,
                *, dropout_rate, training):
    # First linear + ReLU.  bf16 operands -> MXU peak; f32 accumulate.
    x = x_ref[...].astype(jnp.bfloat16)
    h = jnp.dot(x, w1_ref[...], preferred_element_type=jnp.float32)
    h = jnp.maximum(h + b1_ref[...], 0.0)

    # Second linear.
    y = jnp.dot(h.astype(jnp.bfloat16), w2_ref[...],
                preferred_element_type=jnp.float32) + b2_ref[...]

    if training and dropout_rate > 0.0:
        # Inverted dropout via the hardware PRNG (torch semantics: keep with
        # prob 1-p, scale kept values by 1/(1-p)).  Integer-threshold compare
        # avoids a shift + u32->f32 convert + float mul per element.
        # NOTE: mask depends on the tiling (program_id enters the seed).
        keep_prob = 1.0 - dropout_rate
        inv_keep = 1.0 / keep_prob                         # hoisted constant
        threshold = jnp.uint32(int(keep_prob * (1 << 32)))
        # Stride by num_programs so nearby seeds never reuse a stream.
        pltpu.prng_seed(seed_ref[0] * pl.num_programs(0) + pl.program_id(0))
        bits = pltpu.bitcast(pltpu.prng_random_bits(y.shape), jnp.uint32)
        y = jnp.where(bits < threshold, y * inv_keep, 0.0)

    o_ref[...] = y.astype(o_ref.dtype)


def feed_forward(x, params, *, seed=0, training=False, tm=256):
    """x: (B, T, C) float32.  params: (w1 (C,4C), b1 (1,4C), w2 (4C,C), b2 (1,C))."""
    B, T, C = x.shape
    w1, b1, w2, b2 = params
    H = w1.shape[1]
    M = B * T

    # Small-M handling: shrink the row tile to the token count (sublane
    # aligned), then pad tokens up to a tile multiple instead of asserting.
    tm = min(tm, _round_up(M, 8))
    M_pad = _round_up(M, tm)

    x2 = x.reshape(M, C)
    if M_pad != M:
        x2 = jnp.pad(x2, ((0, M_pad - M), (0, 0)))

    # bf16 weights: MXU-native dtype on every TPU generation, half the VMEM.
    w1b = w1.astype(jnp.bfloat16)
    w2b = w2.astype(jnp.bfloat16)

    kernel = functools.partial(_ffn_kernel, dropout_rate=DROPOUT,
                               training=training)

    cost = pl.CostEstimate(
        flops=2 * M_pad * C * H * 2,          # two matmuls
        transcendentals=0,
        bytes_accessed=(x2.size * 4 + w1b.size * 2 + w2b.size * 2
                        + b1.size * 4 + b2.size * 4 + M_pad * C * 4),
    )

    out = pl.pallas_call(
        kernel,
        out_shape=jax.ShapeDtypeStruct((M_pad, C), x.dtype),
        grid_spec=pltpu.PrefetchScalarGridSpec(
            num_scalar_prefetch=1,            # dropout seed lands in SMEM
            grid=(M_pad // tm,),              # tile token rows; weights resident
            in_specs=[
                pl.BlockSpec((tm, C), lambda i, s: (i, 0)),   # x tile
                pl.BlockSpec((C, H),  lambda i, s: (0, 0)),   # W1 (full, bf16)
                pl.BlockSpec((1, H),  lambda i, s: (0, 0)),   # b1 (f32)
                pl.BlockSpec((H, C),  lambda i, s: (0, 0)),   # W2 (full, bf16)
                pl.BlockSpec((1, C),  lambda i, s: (0, 0)),   # b2 (f32)
            ],
            out_specs=pl.BlockSpec((tm, C), lambda i, s: (i, 0)),
        ),
        compiler_params=pltpu.CompilerParams(
            dimension_semantics=("parallel",),      # shards rows across v7x TCs
            vmem_limit_bytes=32 * 1024 * 1024,      # headroom; usage ~14 MiB
        ),
        cost_estimate=cost,
    )(jnp.array([seed], dtype=jnp.int32), x2, w1b, b1, w2b, b2)

    if M_pad != M:
        out = out[:M]
    return out.reshape(B, T, C)


def init_feed_forward_params(key, n_embd):
    """Mirrors torch.nn.Linear's U(-1/sqrt(fan_in), 1/sqrt(fan_in)) init."""
    hidden = 4 * n_embd
    k1, k2, k3, k4 = jax.random.split(key, 4)
    bound1 = 1.0 / jnp.sqrt(n_embd)
    bound2 = 1.0 / jnp.sqrt(hidden)
    w1 = jax.random.uniform(k1, (n_embd, hidden), jnp.float32, -bound1, bound1)
    b1 = jax.random.uniform(k2, (1, hidden), jnp.float32, -bound1, bound1)
    w2 = jax.random.uniform(k3, (hidden, n_embd), jnp.float32, -bound2, bound2)
    b2 = jax.random.uniform(k4, (1, n_embd), jnp.float32, -bound2, bound2)
    return (w1, b1, w2, b2)


def feed_forward_ref(x, params):
    """Pure-JAX reference mirroring the kernel's bf16-matmul / f32-accumulate
    path (eval mode: dropout is identity)."""
    w1, b1, w2, b2 = params
    h = jnp.dot(x.astype(jnp.bfloat16), w1.astype(jnp.bfloat16),
                preferred_element_type=jnp.float32) + b1
    h = jnp.maximum(h, 0.0)
    return jnp.dot(h.astype(jnp.bfloat16), w2.astype(jnp.bfloat16),
                   preferred_element_type=jnp.float32) + b2


if __name__ == "__main__":
    key = jax.random.PRNGKey(0)
    kp, kx = jax.random.split(key)

    B, T = 2, 8                       # small batch / seq for the smoke test
    params = init_feed_forward_params(kp, N_EMBD)
    x = jax.random.normal(kx, (B, T, N_EMBD), jnp.float32)

    # Eval mode (dropout = identity): check against the pure-JAX reference.
    out = jax.block_until_ready(feed_forward(x, params, training=False))
    ref = feed_forward_ref(x, params)
    assert out.shape == (B, T, N_EMBD)
    assert jnp.allclose(out, ref, atol=1e-2, rtol=1e-2), "mismatch vs reference"

    # Training-mode dropout is implemented with the TPU hardware PRNG
    # (pltpu.prng_seed / prng_random_bits); it is not exercised here because
    # the CPU interpreter has no lowering for those primitives.
    print("KERNEL_OK")
</pallas_src>

<mosaic_0001>
module attributes {stable_mosaic.version = 11 : i64} {
  func.func @_ffn_kernel(%arg0: i32, %arg1: memref<1xi32, #tpu.memory_space<smem>>, %arg2: memref<16x384xf32, #tpu.memory_space<vmem>>, %arg3: memref<384x1536xbf16, #tpu.memory_space<vmem>>, %arg4: memref<1x1536xf32, #tpu.memory_space<vmem>>, %arg5: memref<1536x384xbf16, #tpu.memory_space<vmem>>, %arg6: memref<1x384xf32, #tpu.memory_space<vmem>>, %arg7: memref<16x384xf32, #tpu.memory_space<vmem>>) attributes {dimension_semantics = [#tpu.dimension_semantics<parallel>], iteration_bounds = array<i64: 1>, scalar_prefetch = 1 : i64, scratch_operands = 0 : i64, tpu.core_type = #tpu.core_type<tc>, window_params = [{transform_indices = @transform_0, window_bounds = array<i64: 16, 384>}, {pipeline_mode = #tpu.pipeline_mode<synchronous>, transform_indices = @transform_1, window_bounds = array<i64: 384, 1536>}, {pipeline_mode = #tpu.pipeline_mode<synchronous>, transform_indices = @transform_2, window_bounds = array<i64: 1, 1536>}, {pipeline_mode = #tpu.pipeline_mode<synchronous>, transform_indices = @transform_3, window_bounds = array<i64: 1536, 384>}, {pipeline_mode = #tpu.pipeline_mode<synchronous>, transform_indices = @transform_4, window_bounds = array<i64: 1, 384>}, {transform_indices = @transform_5, window_bounds = array<i64: 16, 384>}]} {
    %c0 = arith.constant 0 : index
    %c0_0 = arith.constant 0 : index
    %0 = vector.load %arg2[%c0, %c0_0] : memref<16x384xf32, #tpu.memory_space<vmem>>, vector<16x384xf32>
    %1 = arith.truncf %0 : vector<16x384xf32> to vector<16x384xbf16>
    %c0_1 = arith.constant 0 : index
    %c0_2 = arith.constant 0 : index
    %2 = vector.load %arg3[%c0_1, %c0_2] : memref<384x1536xbf16, #tpu.memory_space<vmem>>, vector<384x1536xbf16>
    %cst = arith.constant dense<0.000000e+00> : vector<16x1536xf32>
    %3 = tpu.matmul %1, %2, %cst {dimension_numbers = #tpu.dot_dimension_numbers<[1], [0], [0], [1], [0, 0, 1, 1], [], []>} : vector<16x384xbf16>, vector<384x1536xbf16>, vector<16x1536xf32> -> vector<16x1536xf32>
    %c0_3 = arith.constant 0 : index
    %c0_4 = arith.constant 0 : index
    %4 = vector.load %arg4[%c0_3, %c0_4] : memref<1x1536xf32, #tpu.memory_space<vmem>>, vector<1x1536xf32>
    %5 = vector.broadcast %4 : vector<1x1536xf32> to vector<16x1536xf32>
    %6 = arith.addf %3, %5 : vector<16x1536xf32>
    %cst_5 = arith.constant 0.000000e+00 : f32
    %7 = vector.broadcast %cst_5 : f32 to vector<16x1536xf32>
    %8 = arith.maximumf %6, %7 : vector<16x1536xf32>
    %9 = arith.truncf %8 : vector<16x1536xf32> to vector<16x1536xbf16>
    %c0_6 = arith.constant 0 : index
    %c0_7 = arith.constant 0 : index
    %10 = vector.load %arg5[%c0_6, %c0_7] : memref<1536x384xbf16, #tpu.memory_space<vmem>>, vector<1536x384xbf16>
    %cst_8 = arith.constant dense<0.000000e+00> : vector<16x384xf32>
    %11 = tpu.matmul %9, %10, %cst_8 {dimension_numbers = #tpu.dot_dimension_numbers<[1], [0], [0], [1], [0, 0, 1, 1], [], []>} : vector<16x1536xbf16>, vector<1536x384xbf16>, vector<16x384xf32> -> vector<16x384xf32>
    %c0_9 = arith.constant 0 : index
    %c0_10 = arith.constant 0 : index
    %12 = vector.load %arg6[%c0_9, %c0_10] : memref<1x384xf32, #tpu.memory_space<vmem>>, vector<1x384xf32>
    %13 = vector.broadcast %12 : vector<1x384xf32> to vector<16x384xf32>
    %14 = arith.addf %11, %13 : vector<16x384xf32>
    %c0_11 = arith.constant 0 : index
    %c0_12 = arith.constant 0 : index
    %15 = vector.load %arg7[%c0_11, %c0_12] : memref<16x384xf32, #tpu.memory_space<vmem>>, vector<16x384xf32>
    tpu.vector_store %arg7[%c0_11, %c0_12], %14 {strides = array<i32>} : memref<16x384xf32, #tpu.memory_space<vmem>>, vector<16x384xf32>,
    return
  }
  func.func @transform_0(%arg0: i32, %arg1: memref<1xi32, #tpu.memory_space<smem>>) -> (i32, i32) {
    %c0_i32 = arith.constant 0 : i32
    %c0_i32_0 = arith.constant 0 : i32
    return %arg0, %c0_i32 : i32, i32
  }
  func.func @transform_1(%arg0: i32, %arg1: memref<1xi32, #tpu.memory_space<smem>>) -> (i32, i32) {
    %c0_i32 = arith.constant 0 : i32
    %c0_i32_0 = arith.constant 0 : i32
    %c0_i32_1 = arith.constant 0 : i32
    return %c0_i32, %c0_i32_0 : i32, i32
  }
  func.func @transform_2(%arg0: i32, %arg1: memref<1xi32, #tpu.memory_space<smem>>) -> (i32, i32) {
    %c0_i32 = arith.constant 0 : i32
    %c0_i32_0 = arith.constant 0 : i32
    %c0_i32_1 = arith.constant 0 : i32
    return %c0_i32, %c0_i32_0 : i32, i32
  }
  func.func @transform_3(%arg0: i32, %arg1: memref<1xi32, #tpu.memory_space<smem>>) -> (i32, i32) {
    %c0_i32 = arith.constant 0 : i32
    %c0_i32_0 = arith.constant 0 : i32
    %c0_i32_1 = arith.constant 0 : i32
    return %c0_i32, %c0_i32_0 : i32, i32
  }
  func.func @transform_4(%arg0: i32, %arg1: memref<1xi32, #tpu.memory_space<smem>>) -> (i32, i32) {
    %c0_i32 = arith.constant 0 : i32
    %c0_i32_0 = arith.constant 0 : i32
    %c0_i32_1 = arith.constant 0 : i32
    return %c0_i32, %c0_i32_0 : i32, i32
  }
  func.func @transform_5(%arg0: i32, %arg1: memref<1xi32, #tpu.memory_space<smem>>) -> (i32, i32) {
    %c0_i32 = arith.constant 0 : i32
    %c0_i32_0 = arith.constant 0 : i32
    return %arg0, %c0_i32 : i32, i32
  }
}

</mosaic_0001>

<bundles_post_ra>
// kernel: tpu_custom_call.1
= control target key start
LH: loop header
LB: loop body
LE: loop exit
PB: predicated region body
PF: predicated region fallthrough
CT: control target
= control target key end

     0   :  { %12 = vsyncpa [#allocation5], 0  ;;  %s6803_s0 = inlined_call_operand.<no memory space> [shape: s32[1], index: 0, kind: input, shape index: {}]   ;;  %s6804_s1 = inlined_call_operand.hbm [shape: f32[16,384], index: 1, kind: input, shape index: {}]   ;;  %s6805_s2 = inlined_call_operand.hbm [shape: bf16[384,1536], index: 2, kind: input, shape index: {}]   ;;  %s6806_s3 = inlined_call_operand.hbm [shape: f32[1,1536], index: 3, kind: input, shape index: {}]   ;;  %s6807_s4 = inlined_call_operand.hbm [shape: bf16[1536,384], index: 4, kind: input, shape index: {}]   ;;  %s6808_s5 = inlined_call_operand.hbm [shape: f32[1,384], index: 5, kind: input, shape index: {}]   ;;  %s6809_s6 = inlined_call_operand.hbm [shape: f32[16,384], index: 6, kind: output, shape index: {}]  }
   0x1   :  { %13 = vsyncpa [#allocation8], 0 }
   0x2   :  { %14 = vsyncpa [#allocation11], 0 }
   0x3   :  { %15 = vsyncpa [#allocation6], 0  ;;  %s6573_s0 = smov [#allocation7]  }
   0x4   :  { %s33_s21 = sshll.u32 %s6573_s0, 4  ;;  %s34_s21 = int_to_ptr.vmem [resolvable:$true] %s33_s21 }
   0x5   :  { %s6453_s22 = scalar_lea.vmem %s34_s21, 36864  ;;  %p6458_p1 = scmp.lt.s32.totalorder %s34_s21, %s34_s21 }
   0x6   :  { %p6454_p0 = scmp.ne.s32.totalorder %s34_s21, %s6453_s22  ;;  %p6459_p2 = scmp.lt.s32.totalorder %s6453_s22, %s6453_s22 }
   0x8   :  { %p6460_p3 = por %p6459_p2, %p6458_p1 }
   0xa   :  { %p6461_p4 = pnand %p6460_p3, %p6454_p0 }
   0xc   :  { %6464 = shalt.err (!%p6461_p4)
}
   0xd   :  { %s6574_s23 = smov 768   ;;  %s6575_s24 = smov 48  }
   0xe   :  { %39 = dma.hbm_to_vmem [thread:$0]  %s6805_s2, 36864, %s34_s21, [#allocation8], %s6574_s23, %s6574_s23, %s6575_s24  }
   0xf   :  { %s6576_s27 = smov [#allocation10]  }
  0x10   :  { %s55_s28 = sshll.u32 %s6576_s27, 4  ;;  %s56_s28 = int_to_ptr.vmem [resolvable:$true] %s55_s28 }
  0x11   :  { %s6473_s29 = scalar_lea.vmem %s56_s28, 36864  ;;  %p6478_p6 = scmp.lt.s32.totalorder %s56_s28, %s56_s28 }
  0x12   :  { %p6474_p5 = scmp.ne.s32.totalorder %s56_s28, %s6473_s29  ;;  %p6479_p7 = scmp.lt.s32.totalorder %s6473_s29, %s6473_s29 }
  0x14   :  { %p6480_p8 = por %p6479_p7, %p6478_p6 }
  0x16   :  { %p6481_p9 = pnand %p6480_p8, %p6474_p5 }
  0x18   :  { %6484 = shalt.err (!%p6481_p9)
}
  0x19   :  { %s6577_s30 = smov 192   ;;  %s6578_s7 = smov 12  }
  0x1a   :  { %61 = dma.hbm_to_vmem [thread:$0]  %s6807_s4, 36864, %s56_s28, [#allocation11], %s6577_s30, %s6577_s30, %s6578_s7  }
  0x1b   :  { %s6579_s10 = smov [#allocation4]  }
  0x1c   :  { %s21_s11 = sshll.u32 %s6579_s10, 4  ;;  %s22_s11 = int_to_ptr.vmem [resolvable:$true] %s21_s11 }
  0x1d   :  { %s6493_s2 = scalar_lea.vmem %s22_s11, 768  ;;  %p6498_p11 = scmp.lt.s32.totalorder %s22_s11, %s22_s11 }
  0x1e   :  { %p6494_p10 = scmp.ne.s32.totalorder %s22_s11, %s6493_s2  ;;  %p6499_p12 = scmp.lt.s32.totalorder %s6493_s2, %s6493_s2 }
  0x20   :  { %p6500_p13 = por %p6499_p12, %p6498_p11 }
  0x22   :  { %p6501_p0 = pnand %p6500_p13, %p6494_p10 }
  0x24   :  { %6504 = shalt.err (!%p6501_p0)
}
  0x25   :  { %s6580_s12 = smov 384   ;;  %s6581_s13 = smov 24  }
  0x26   :  { %27 = dma.hbm_to_vmem [thread:$0]  %s6804_s1, 768, %s22_s11, [#allocation5], %s6580_s12, %s6580_s12, %s6581_s13  }
  0x27   :  { %s6582_s4 = smov [#allocation9]   ;;  %s6583_s17 = smov [#allocation12]  }
  0x28   :  { %s46_s16 = sshll.u32 %s6582_s4, 4  ;;  %s68_s18 = sshll.u32 %s6583_s17, 4  ;;  %s47_s16 = int_to_ptr.vmem [resolvable:$true] %s46_s16  ;;  %s69_s18 = int_to_ptr.vmem [resolvable:$true] %s68_s18 }
  0x29   :  { %s6513_s19 = scalar_lea.vmem %s47_s16, 192  ;;  %p6518_p2 = scmp.lt.s32.totalorder %s47_s16, %s47_s16 }
  0x2a   :  { %p6514_p1 = scmp.ne.s32.totalorder %s47_s16, %s6513_s19  ;;  %p6519_p3 = scmp.lt.s32.totalorder %s6513_s19, %s6513_s19 }
  0x2c   :  { %p6520_p4 = por %p6519_p3, %p6518_p2 }
  0x2e   :  { %p6521_p5 = pnand %p6520_p4, %p6514_p1 }
  0x30   :  { %6524 = shalt.err (!%p6521_p5)
}
  0x31   :  { %49 = dma.hbm_to_vmem [thread:$0]  %s6806_s3, 192, %s47_s16, [#allocation8]  }
  0x32   :  { %s6533_s21 = scalar_lea.vmem %s69_s18, 48  ;;  %s6537_s1 = scalar_lea.vmem %s69_s18, 64 }
  0x33   :  { %p6534_p6 = scmp.ne.s32.totalorder %s69_s18, %s6533_s21  ;;  %p6538_p7 = scmp.lt.s32.totalorder %s69_s18, %s69_s18 }
  0x34   :  { %p6539_p8 = scmp.lt.s32.totalorder %s6537_s1, %s6533_s21 }
  0x36   :  { %p6540_p9 = por %p6539_p8, %p6538_p7 }
  0x38   :  { %p6541_p10 = pnand %p6540_p9, %p6534_p6 }
  0x3a   :  { %6544 = shalt.err (!%p6541_p10)
}
  0x3b   :  { %71 = dma.hbm_to_vmem [thread:$0]  %s6808_s5, 48, %s69_s18, [#allocation11]  }
  0x3c   :  { %6565 = dma.done.wait [#allocation5], 768  }
  0x3d   :  { %6566 = vsyncadd [#allocation5], 4294966528 }
  0x3e   :  { %6567 = dma.done.wait [#allocation8], 37056  }
  0x3f   :  { %6568 = vsyncadd [#allocation8], 4294930240 }
  0x40   :  { %6569 = dma.done.wait [#allocation11], 36912  }
  0x41   :  { %6570 = vsyncadd [#allocation11], 4294930384  ;;  %v6584_v0 = vmov 0   ;;  %v5628_v1 = vld [vmem:[#allocation7 + $0x2a4] ss:$48 sps:$4 sm:$0xff]   ;;  %v93_v34 = vld [vmem:[#allocation4 + $0x28] sm:$0xff] }
  0x42   :  { %1964 = vmatprep.mubr.bf16.mxu1 %v6584_v0  ;;  %v5630_v2 = vld [vmem:[#allocation7 + $0x8a4] ss:$48 sps:$4 sm:$0xff]   ;;  %1889 = vmatprep.subr.bf16.mxu0 %v5628_v1  ;;  %v5632_v3 = vld [vmem:[#allocation7 + $0x2a0] ss:$48 sps:$4 sm:$0xff]   ;;  %v5680_v36 = vld [vmem:[#allocation7 + $0x2ac] ss:$48 sps:$4 sm:$0xff]  }
  0x43   :  { %v5633_v4 = vld [vmem:[#allocation7 + $0x8a0] ss:$48 sps:$4 sm:$0xff]   ;;  %1932 = vmatprep.subr.bf16.mxu1 %v5630_v2  ;;  %v5634_v5 = vld [vmem:[#allocation7 + $0x244] ss:$48 sps:$4 sm:$0xff]   ;;  %1890 = vmatpush1.bf16.msra.mxu0 %v5632_v3  ;;  %v5678_v38 = vld [vmem:[#allocation7 + $0x2a8] ss:$48 sps:$4 sm:$0xff]  }
  0x44   :  { %1933 = vmatpush1.bf16.msra.mxu1 %v5633_v4  ;;  %v5636_v6 = vld [vmem:[#allocation7 + $0x844] ss:$48 sps:$4 sm:$0xff]   ;;  %v5638_v7 = vld [vmem:[#allocation7 + $0x240] ss:$48 sps:$4 sm:$0xff]   ;;  %1891 = vmatprep.subr.bf16.mxu0 %v5634_v5  ;;  %v5686_v41 = vld [vmem:[#allocation7 + $0x24c] ss:$48 sps:$4 sm:$0xff]  }
  0x45   :  { %v5639_v8 = vld [vmem:[#allocation7 + $0x840] ss:$48 sps:$4 sm:$0xff]   ;;  %1934 = vmatprep.subr.bf16.mxu1 %v5636_v6  ;;  %v5640_v9 = vld [vmem:[#allocation7 + $0x1e4] ss:$48 sps:$4 sm:$0xff]   ;;  %v5684_v42 = vld [vmem:[#allocation7 + $0x248] ss:$48 sps:$4 sm:$0xff]  }
  0x46   :  { %v5642_v10 = vld [vmem:[#allocation7 + $0x7e4] ss:$48 sps:$4 sm:$0xff]   ;;  %v5644_v11 = vld [vmem:[#allocation7 + $0x1e0] ss:$48 sps:$4 sm:$0xff]   ;;  %v5692_v45 = vld [vmem:[#allocation7 + $0x1ec] ss:$48 sps:$4 sm:$0xff]  }
  0x47   :  { %v5645_v12 = vld [vmem:[#allocation7 + $0x7e0] ss:$48 sps:$4 sm:$0xff]   ;;  %1892 = vmatpush1.bf16.msra.mxu0 %v5638_v7  ;;  %v5646_v13 = vld [vmem:[#allocation7 + $0x184] ss:$48 sps:$4 sm:$0xff]   ;;  %v5690_v46 = vld [vmem:[#allocation7 + $0x1e8] ss:$48 sps:$4 sm:$0xff]  }
  0x48   :  { %1935 = vmatpush1.bf16.msra.mxu1 %v5639_v8  ;;  %1893 = vmatprep.subr.bf16.mxu0 %v5640_v9  ;;  %v5648_v14 = vld [vmem:[#allocation7 + $0x784] ss:$48 sps:$4 sm:$0xff]   ;;  %v5650_v15 = vld [vmem:[#allocation7 + $0x180] ss:$48 sps:$4 sm:$0xff]   ;;  %v5698_v49 = vld [vmem:[#allocation7 + $0x18c] ss:$48 sps:$4 sm:$0xff]  }
  0x49   :  { %1936 = vmatprep.subr.bf16.mxu1 %v5642_v10  ;;  %v5651_v16 = vld [vmem:[#allocation7 + $0x780] ss:$48 sps:$4 sm:$0xff]   ;;  %v5652_v17 = vld [vmem:[#allocation7 + $0x124] ss:$48 sps:$4 sm:$0xff]   ;;  %v89_v50 = vld [vmem:[#allocation4 + $0x8] sm:$0xff]  ;;  %s6585_s3 = smov [#allocation13]  }
  0x4a   :  { %v5654_v18 = vld [vmem:[#allocation7 + $0x724] ss:$48 sps:$4 sm:$0xff]   ;;  %v5656_v19 = vld [vmem:[#allocation7 + $0x120] ss:$48 sps:$4 sm:$0xff]   ;;  %v5696_v52 = vld [vmem:[#allocation7 + $0x188] ss:$48 sps:$4 sm:$0xff]  }
  0x4b   :  { %1894 = vmatpush1.bf16.msra.mxu0 %v5644_v11  ;;  %v5657_v20 = vld [vmem:[#allocation7 + $0x720] ss:$48 sps:$4 sm:$0xff]   ;;  %v5658_v21 = vld [vmem:[#allocation7 + $0xc4] ss:$48 sps:$4 sm:$0xff]   ;;  %v5704_v56 = vld [vmem:[#allocation7 + $0x12c] ss:$48 sps:$4 sm:$0xff]  }
  0x4c   :  { %1937 = vmatpush1.bf16.msra.mxu1 %v5645_v12  ;;  %1895 = vmatprep.subr.bf16.mxu0 %v5646_v13  ;;  %v5660_v22 = vld [vmem:[#allocation7 + $0x6c4] ss:$48 sps:$4 sm:$0xff]   ;;  %v5662_v23 = vld [vmem:[#allocation7 + $0xc0] ss:$48 sps:$4 sm:$0xff]   ;;  %v5702_v57 = vld [vmem:[#allocation7 + $0x128] ss:$48 sps:$4 sm:$0xff]  }
  0x4d   :  { %1938 = vmatprep.subr.bf16.mxu1 %v5648_v14  ;;  %v5663_v24 = vld [vmem:[#allocation7 + $0x6c0] ss:$48 sps:$4 sm:$0xff]   ;;  %v5664_v25 = vld [vmem:[#allocation7 + $0x64] ss:$48 sps:$4 sm:$0xff]   ;;  %v5710_v60 = vld [vmem:[#allocation7 + $0xcc] ss:$48 sps:$4 sm:$0xff]  }
  0x4e   :  { %v5666_v26 = vld [vmem:[#allocation7 + $0x664] ss:$48 sps:$4 sm:$0xff]   ;;  %v5668_v27 = vld [vmem:[#allocation7 + $0x60] ss:$48 sps:$4 sm:$0xff]   ;;  %v5708_v61 = vld [vmem:[#allocation7 + $0xc8] ss:$48 sps:$4 sm:$0xff]  }
  0x4f   :  { %1896 = vmatpush1.bf16.msra.mxu0 %v5650_v15  ;;  %v5669_v28 = vld [vmem:[#allocation7 + $0x660] ss:$48 sps:$4 sm:$0xff]   ;;  %v5670_v29 = vld [vmem:[#allocation7 + $0x4] ss:$48 sps:$4 sm:$0xff]   ;;  %v5716_v1 = vld [vmem:[#allocation7 + $0x6c] ss:$48 sps:$4 sm:$0xff]  }
  0x50   :  { %1939 = vmatpush1.bf16.msra.mxu1 %v5651_v16  ;;  %1897 = vmatprep.subr.bf16.mxu0 %v5652_v17  ;;  %v5672_v30 = vld [vmem:[#allocation7 + $0x604] ss:$48 sps:$4 sm:$0xff]   ;;  %v5674_v31 = vld [vmem:[#allocation7] ss:$48 sps:$4 sm:$0xff]   ;;  %v5714_v2 = vld [vmem:[#allocation7 + $0x68] ss:$48 sps:$4 sm:$0xff]  }
  0x51   :  { %1940 = vmatprep.subr.bf16.mxu1 %v5654_v18  ;;  %v5675_v32 = vld [vmem:[#allocation7 + $0x600] ss:$48 sps:$4 sm:$0xff]   ;;  %v5676_v35 = vld [vmem:[#allocation7 + $0x5a4] ss:$48 sps:$4 sm:$0xff]   ;;  %v5722_v5 = vld [vmem:[#allocation7 + $0xc] ss:$48 sps:$4 sm:$0xff]  }
  0x52   :  { %v90_v33 = vld [vmem:[#allocation4 + $0x10] sm:$0xff]  ;;  %v92_v51 = vld [vmem:[#allocation4 + $0x20] sm:$0xff]  ;;  %v5720_v6 = vld [vmem:[#allocation7 + $0x8] ss:$48 sps:$4 sm:$0xff]   ;;  %s4893_s5 = sshll.u32 %s6585_s3, 4  ;;  %s4894_s5 = int_to_ptr.vmem [resolvable:$true] %s4893_s5 }
  0x53   :  { %1898 = vmatpush1.bf16.msra.mxu0 %v5656_v19  ;;  %v6640_v37 = vpack.c.bf16 %v93_v34, %v90_v33  ;;  %v5681_v39 = vld [vmem:[#allocation7 + $0x5a0] ss:$48 sps:$4 sm:$0xff]   ;;  %v5682_v40 = vld [vmem:[#allocation7 + $0x544] ss:$48 sps:$4 sm:$0xff]   ;;  %v6643_v54 = vpack.c.bf16 %v92_v51, %v89_v50  ;;  %v91_v9 = vld [vmem:[#allocation4 + $0x18] sm:$0xff]  ;;  %s6545_s24 = scalar_lea.vmem %s4894_s5, 768  ;;  %p6550_p12 = scmp.lt.s32.totalorder %s4894_s5, %s4894_s5 }
  0x54   :  { %1941 = vmatpush1.bf16.msra.mxu1 %v5657_v20  ;;  %1899 = vmatprep.subr.bf16.mxu0 %v5658_v21  ;;  %v5687_v43 = vld [vmem:[#allocation7 + $0x540] ss:$48 sps:$4 sm:$0xff]   ;;  %v5688_v44 = vld [vmem:[#allocation7 + $0x4e4] ss:$48 sps:$4 sm:$0xff]   ;;  %v5726_v10 = vld [vmem:[#allocation7 + $0x5ac] ss:$48 sps:$4 sm:$0xff]   ;;  %p6546_p11 = scmp.ne.s32.totalorder %s4894_s5, %s6545_s24  ;;  %p6551_p13 = scmp.lt.s32.totalorder %s6545_s24, %s6545_s24 }
  0x55   :  { %1942 = vmatprep.subr.bf16.mxu1 %v5660_v22  ;;  %v5693_v47 = vld [vmem:[#allocation7 + $0x4e0] ss:$48 sps:$4 sm:$0xff]   ;;  %v5694_v48 = vld [vmem:[#allocation7 + $0x484] ss:$48 sps:$4 sm:$0xff]   ;;  %1921 = vmatprep.mubr.bf16.mxu0 %v6643_v54  ;;  %v5729_v11 = vld [vmem:[#allocation7 + $0x8ac] ss:$48 sps:$4 sm:$0xff]  }
  0x56   :  { %v5699_v53 = vld [vmem:[#allocation7 + $0x480] ss:$48 sps:$4 sm:$0xff]   ;;  %v5700_v55 = vld [vmem:[#allocation7 + $0x424] ss:$48 sps:$4 sm:$0xff]   ;;  %v5724_v13 = vld [vmem:[#allocation7 + $0x5a8] ss:$48 sps:$4 sm:$0xff]   ;;  %p6552_p0 = por %p6551_p13, %p6550_p12 }
  0x57   :  { %1900 = vmatpush1.bf16.msra.mxu0 %v5662_v23  ;;  %v5705_v58 = vld [vmem:[#allocation7 + $0x420] ss:$48 sps:$4 sm:$0xff]   ;;  %v5706_v59 = vld [vmem:[#allocation7 + $0x3c4] ss:$48 sps:$4 sm:$0xff]   ;;  %v5727_v14 = vld [vmem:[#allocation7 + $0x8a8] ss:$48 sps:$4 sm:$0xff]  }
  0x58   :  { %1943 = vmatpush1.bf16.msra.mxu1 %v5663_v24  ;;  %1901 = vmatprep.subr.bf16.mxu0 %v5664_v25  ;;  %v5711_v62 = vld [vmem:[#allocation7 + $0x3c0] ss:$48 sps:$4 sm:$0xff]   ;;  %v5712_v63 = vld [vmem:[#allocation7 + $0x364] ss:$48 sps:$4 sm:$0xff]   ;;  %v5732_v15 = vld [vmem:[#allocation7 + $0x54c] ss:$48 sps:$4 sm:$0xff]   ;;  %p6553_p1 = pnand %p6552_p0, %p6546_p11 }
  0x59   :  { %1944 = vmatprep.subr.bf16.mxu1 %v5666_v26  ;;  %v5717_v3 = vld [vmem:[#allocation7 + $0x360] ss:$48 sps:$4 sm:$0xff]   ;;  %v5718_v4 = vld [vmem:[#allocation7 + $0x304] ss:$48 sps:$4 sm:$0xff]   ;;  %v5735_v16 = vld [vmem:[#allocation7 + $0x84c] ss:$48 sps:$4 sm:$0xff]  }
  0x5a   :  { %v5723_v7 = vld [vmem:[#allocation7 + $0x300] ss:$48 sps:$4 sm:$0xff]   ;;  %v5730_v17 = vld [vmem:[#allocation7 + $0x548] ss:$48 sps:$4 sm:$0xff]   ;;  %v5738_v19 = vld [vmem:[#allocation7 + $0x4ec] ss:$48 sps:$4 sm:$0xff]  }
  0x5b   :  { %1902 = vmatpush1.bf16.msra.mxu0 %v5668_v27  ;;  %v88_v8 = vld [vmem:[#allocation4] sm:$0xff]  ;;  %v5733_v18 = vld [vmem:[#allocation7 + $0x848] ss:$48 sps:$4 sm:$0xff]   ;;  %v5741_v20 = vld [vmem:[#allocation7 + $0x7ec] ss:$48 sps:$4 sm:$0xff]  }
  0x5c   :  { %1945 = vmatpush1.bf16.msra.mxu1 %v5669_v28  ;;  %1903 = vmatprep.subr.bf16.mxu0 %v5670_v29  ;;  %v6647_v12 = vpack.c.bf16 %v91_v9, %v88_v8  ;;  %v5736_v21 = vld [vmem:[#allocation7 + $0x4e8] ss:$48 sps:$4 sm:$0xff]   ;;  %v5744_v23 = vld [vmem:[#allocation7 + $0x48c] ss:$48 sps:$4 sm:$0xff]   ;;  %v5778_v50 = vld [vmem:[#allocation7 + $0x250] ss:$48 sps:$4 sm:$0xff]  }
  0x5d   :  { %1946 = vmatprep.subr.bf16.mxu1 %v5672_v30  ;;  %v5739_v22 = vld [vmem:[#allocation7 + $0x7e8] ss:$48 sps:$4 sm:$0xff]   ;;  %v5747_v24 = vld [vmem:[#allocation7 + $0x78c] ss:$48 sps:$4 sm:$0xff]   ;;  %v5781_v51 = vld [vmem:[#allocation7 + $0x850] ss:$48 sps:$4 sm:$0xff]  }
  0x5e   :  { %v5742_v25 = vld [vmem:[#allocation7 + $0x488] ss:$48 sps:$4 sm:$0xff]   ;;  %v5750_v27 = vld [vmem:[#allocation7 + $0x42c] ss:$48 sps:$4 sm:$0xff]   ;;  %v5808_v8 = vld [vmem:[#allocation7 + $0x70] ss:$48 sps:$4 sm:$0xff]  }
  0x5f   :  { %1904 = vmatpush1.bf16.msra.mxu0 %v5674_v31  ;;  %v5745_v26 = vld [vmem:[#allocation7 + $0x788] ss:$48 sps:$4 sm:$0xff]   ;;  %v5753_v28 = vld [vmem:[#allocation7 + $0x72c] ss:$48 sps:$4 sm:$0xff]   ;;  %v5811_v9 = vld [vmem:[#allocation7 + $0x670] ss:$48 sps:$4 sm:$0xff]  }
  0x60   :  { %1947 = vmatpush1.bf16.msra.mxu1 %v5675_v32  ;;  %1905 = vmatprep.subr.bf16.mxu0 %v5676_v35  ;;  %v5748_v29 = vld [vmem:[#allocation7 + $0x428] ss:$48 sps:$4 sm:$0xff]   ;;  %v5756_v31 = vld [vmem:[#allocation7 + $0x3cc] ss:$48 sps:$4 sm:$0xff]  }
  0x61   :  { %1975 = vmatprep.subr.bf16.mxu1 %v5680_v36  ;;  %v5751_v30 = vld [vmem:[#allocation7 + $0x728] ss:$48 sps:$4 sm:$0xff]   ;;  %v5759_v32 = vld [vmem:[#allocation7 + $0x6cc] ss:$48 sps:$4 sm:$0xff]  }
  0x62   :  { %v5754_v33 = vld [vmem:[#allocation7 + $0x3c8] ss:$48 sps:$4 sm:$0xff]   ;;  %v5762_v35 = vld [vmem:[#allocation7 + $0x36c] ss:$48 sps:$4 sm:$0xff]  }
  0x63   :  { %1965 = vmatmul.mubr.bf16.vlgmr.msra.gmra.mxu1 %v6640_v37  ;;  %1906 = vmatpush2.bf16.msra.mxu0 %v5681_v39  ;;  %v5757_v34 = vld [vmem:[#allocation7 + $0x6c8] ss:$48 sps:$4 sm:$0xff]   ;;  %v5765_v36 = vld [vmem:[#allocation7 + $0x66c] ss:$48 sps:$4 sm:$0xff]  }
  0x64   :  { %1976 = vmatpush1.bf16.msra.mxu1 %v5678_v38  ;;  %1907 = vmatprep.subr.bf16.mxu0 %v5682_v40  ;;  %v5760_v38 = vld [vmem:[#allocation7 + $0x368] ss:$48 sps:$4 sm:$0xff]   ;;  %v5768_v40 = vld [vmem:[#allocation7 + $0x30c] ss:$48 sps:$4 sm:$0xff]  }
  0x65   :  { %1977 = vmatprep.subr.bf16.mxu1 %v5686_v41  ;;  %2007 = vmatprep.mubr.bf16.mxu1 %v6643_v54  ;;  %v5763_v39 = vld [vmem:[#allocation7 + $0x668] ss:$48 sps:$4 sm:$0xff]   ;;  %v5771_v41 = vld [vmem:[#allocation7 + $0x60c] ss:$48 sps:$4 sm:$0xff]  }
  0x67   :  { %1908 = vmatpush2.bf16.msra.mxu0 %v5687_v43  ;;  %v5769_v43 = vld [vmem:[#allocation7 + $0x608] ss:$48 sps:$4 sm:$0xff]  }
  0x68   :  { %1978 = vmatpush1.bf16.msra.mxu1 %v5684_v42  ;;  %1909 = vmatprep.subr.bf16.mxu0 %v5688_v44  ;;  %v5766_v42 = vld [vmem:[#allocation7 + $0x308] ss:$48 sps:$4 sm:$0xff]   ;;  %v5774_v44 = vld [vmem:[#allocation7 + $0x2b4] ss:$48 sps:$4 sm:$0xff]  }
  0x69   :  { %1979 = vmatprep.subr.bf16.mxu1 %v5692_v45  ;;  %v5777_v45 = vld [vmem:[#allocation7 + $0x8b4] ss:$48 sps:$4 sm:$0xff]  }
  0x6b   :  { %1910 = vmatpush2.bf16.msra.mxu0 %v5693_v47  ;;  %v5775_v47 = vld [vmem:[#allocation7 + $0x8b0] ss:$48 sps:$4 sm:$0xff]  }
  0x6c   :  { %1980 = vmatpush1.bf16.msra.mxu1 %v5690_v46  ;;  %1911 = vmatprep.subr.bf16.mxu0 %v5694_v48  ;;  %v5772_v46 = vld [vmem:[#allocation7 + $0x2b0] ss:$48 sps:$4 sm:$0xff]   ;;  %v5780_v48 = vld [vmem:[#allocation7 + $0x254] ss:$48 sps:$4 sm:$0xff]  }
  0x6d   :  { %1981 = vmatprep.subr.bf16.mxu1 %v5698_v49  ;;  %v5783_v49 = vld [vmem:[#allocation7 + $0x854] ss:$48 sps:$4 sm:$0xff]  }
  0x6f   :  { %1912 = vmatpush2.bf16.msra.mxu0 %v5699_v53  ;;  %v5789_v53 = vld [vmem:[#allocation7 + $0x7f4] ss:$48 sps:$4 sm:$0xff]  }
  0x70   :  { %1982 = vmatpush1.bf16.msra.mxu1 %v5696_v52  ;;  %1913 = vmatprep.subr.bf16.mxu0 %v5700_v55  ;;  %v5786_v52 = vld [vmem:[#allocation7 + $0x1f4] ss:$48 sps:$4 sm:$0xff]   ;;  %v5784_v55 = vld [vmem:[#allocation7 + $0x1f0] ss:$48 sps:$4 sm:$0xff]  }
  0x71   :  { %1983 = vmatprep.subr.bf16.mxu1 %v5704_v56  ;;  %v5787_v56 = vld [vmem:[#allocation7 + $0x7f0] ss:$48 sps:$4 sm:$0xff]  }
  0x73   :  { %1914 = vmatpush2.bf16.msra.mxu0 %v5705_v58  ;;  %v5795_v58 = vld [vmem:[#allocation7 + $0x794] ss:$48 sps:$4 sm:$0xff]  }
  0x74   :  { %1984 = vmatpush1.bf16.msra.mxu1 %v5702_v57  ;;  %1915 = vmatprep.subr.bf16.mxu0 %v5706_v59  ;;  %v5792_v57 = vld [vmem:[#allocation7 + $0x194] ss:$48 sps:$4 sm:$0xff]   ;;  %v5790_v59 = vld [vmem:[#allocation7 + $0x190] ss:$48 sps:$4 sm:$0xff]  }
  0x75   :  { %1985 = vmatprep.subr.bf16.mxu1 %v5710_v60  ;;  %v5793_v60 = vld [vmem:[#allocation7 + $0x790] ss:$48 sps:$4 sm:$0xff]  }
  0x77   :  { %1916 = vmatpush2.bf16.msra.mxu0 %v5711_v62  ;;  %v5801_v62 = vld [vmem:[#allocation7 + $0x734] ss:$48 sps:$4 sm:$0xff]  }
  0x78   :  { %1986 = vmatpush1.bf16.msra.mxu1 %v5708_v61  ;;  %1917 = vmatprep.subr.bf16.mxu0 %v5712_v63  ;;  %v5798_v61 = vld [vmem:[#allocation7 + $0x134] ss:$48 sps:$4 sm:$0xff]   ;;  %v5796_v63 = vld [vmem:[#allocation7 + $0x130] ss:$48 sps:$4 sm:$0xff]  }
  0x79   :  { %1987 = vmatprep.subr.bf16.mxu1 %v5716_v1  ;;  %v5799_v1 = vld [vmem:[#allocation7 + $0x730] ss:$48 sps:$4 sm:$0xff]  }
  0x7b   :  { %1918 = vmatpush2.bf16.msra.mxu0 %v5717_v3  ;;  %v5807_v3 = vld [vmem:[#allocation7 + $0x6d4] ss:$48 sps:$4 sm:$0xff]  }
  0x7c   :  { %1988 = vmatpush1.bf16.msra.mxu1 %v5714_v2  ;;  %1919 = vmatprep.subr.bf16.mxu0 %v5718_v4  ;;  %v5804_v2 = vld [vmem:[#allocation7 + $0xd4] ss:$48 sps:$4 sm:$0xff]   ;;  %v5802_v4 = vld [vmem:[#allocation7 + $0xd0] ss:$48 sps:$4 sm:$0xff]  }
  0x7d   :  { %1989 = vmatprep.subr.bf16.mxu1 %v5722_v5  ;;  %v5805_v5 = vld [vmem:[#allocation7 + $0x6d0] ss:$48 sps:$4 sm:$0xff]  }
  0x7f   :  { %1920 = vmatpush2.bf16.msra.mxu0 %v5723_v7  ;;  %v5813_v7 = vld [vmem:[#allocation7 + $0x674] ss:$48 sps:$4 sm:$0xff]  }
  0x80   :  { %1990 = vmatpush1.bf16.msra.mxu1 %v5720_v6  ;;  %2018 = vmatprep.subr.bf16.mxu0 %v5729_v11  ;;  %v5810_v6 = vld [vmem:[#allocation7 + $0x74] ss:$48 sps:$4 sm:$0xff]  }
  0x81   :  { %1991 = vmatprep.subr.bf16.mxu1 %v5726_v10  ;;  %v5816_v10 = vld [vmem:[#allocation7 + $0x14] ss:$48 sps:$4 sm:$0xff]  }
  0x82   :  { %1922 = vmatmul.mubr.bf16.vlgmr.msra.gmra.mxu0 %v6647_v12  ;;  %v5819_v11 = vld [vmem:[#allocation7 + $0x614] ss:$48 sps:$4 sm:$0xff]  }
  0x83   :  { %2019 = vmatpush1.bf16.msra.mxu0 %v5727_v14  ;;  %2050 = vmatprep.mubr.bf16.mxu0 %v6584_v0  ;;  %v5817_v14 = vld [vmem:[#allocation7 + $0x610] ss:$48 sps:$4 sm:$0xff]  }
  0x84   :  { %1992 = vmatpush2.bf16.msra.mxu1 %v5724_v13  ;;  %2020 = vmatprep.subr.bf16.mxu0 %v5735_v16  ;;  %v5814_v13 = vld [vmem:[#allocation7 + $0x10] ss:$48 sps:$4 sm:$0xff]   ;;  %v5825_v16 = vld [vmem:[#allocation7 + $0x2bc] ss:$48 sps:$4 sm:$0xff]  }
  0x85   :  { %1993 = vmatprep.subr.bf16.mxu1 %v5732_v15  ;;  %v5822_v15 = vld [vmem:[#allocation7 + $0x5b4] ss:$48 sps:$4 sm:$0xff]  }
  0x87   :  { %2021 = vmatpush1.bf16.msra.mxu0 %v5733_v18  ;;  %v5823_v18 = vld [vmem:[#allocation7 + $0x2b8] ss:$48 sps:$4 sm:$0xff]  }
  0x88   :  { %1994 = vmatpush2.bf16.msra.mxu1 %v5730_v17  ;;  %2022 = vmatprep.subr.bf16.mxu0 %v5741_v20  ;;  %v5820_v17 = vld [vmem:[#allocation7 + $0x5b0] ss:$48 sps:$4 sm:$0xff]   ;;  %v5831_v20 = vld [vmem:[#allocation7 + $0x25c] ss:$48 sps:$4 sm:$0xff]  }
  0x89   :  { %1995 = vmatprep.subr.bf16.mxu1 %v5738_v19  ;;  %v5828_v19 = vld [vmem:[#allocation7 + $0x554] ss:$48 sps:$4 sm:$0xff]  }
  0x8b   :  { %2023 = vmatpush1.bf16.msra.mxu0 %v5739_v22  ;;  %v5829_v22 = vld [vmem:[#allocation7 + $0x258] ss:$48 sps:$4 sm:$0xff]  }
  0x8c   :  { %1996 = vmatpush2.bf16.msra.mxu1 %v5736_v21  ;;  %2024 = vmatprep.subr.bf16.mxu0 %v5747_v24  ;;  %v5826_v21 = vld [vmem:[#allocation7 + $0x550] ss:$48 sps:$4 sm:$0xff]   ;;  %v5837_v24 = vld [vmem:[#allocation7 + $0x1fc] ss:$48 sps:$4 sm:$0xff]  }
  0x8d   :  { %1997 = vmatprep.subr.bf16.mxu1 %v5744_v23  ;;  %v5834_v23 = vld [vmem:[#allocation7 + $0x4f4] ss:$48 sps:$4 sm:$0xff]  }
  0x8f   :  { %2025 = vmatpush1.bf16.msra.mxu0 %v5745_v26  ;;  %v5835_v26 = vld [vmem:[#allocation7 + $0x1f8] ss:$48 sps:$4 sm:$0xff]  }
  0x90   :  { %1998 = vmatpush2.bf16.msra.mxu1 %v5742_v25  ;;  %2026 = vmatprep.subr.bf16.mxu0 %v5753_v28  ;;  %v5832_v25 = vld [vmem:[#allocation7 + $0x4f0] ss:$48 sps:$4 sm:$0xff]   ;;  %v5843_v28 = vld [vmem:[#allocation7 + $0x19c] ss:$48 sps:$4 sm:$0xff]  }
  0x91   :  { %1999 = vmatprep.subr.bf16.mxu1 %v5750_v27  ;;  %v5840_v27 = vld [vmem:[#allocation7 + $0x494] ss:$48 sps:$4 sm:$0xff]  }
  0x93   :  { %2027 = vmatpush1.bf16.msra.mxu0 %v5751_v30  ;;  %v5841_v30 = vld [vmem:[#allocation7 + $0x198] ss:$48 sps:$4 sm:$0xff]  }
  0x94   :  { %2000 = vmatpush2.bf16.msra.mxu1 %v5748_v29  ;;  %2028 = vmatprep.subr.bf16.mxu0 %v5759_v32  ;;  %v5838_v29 = vld [vmem:[#allocation7 + $0x490] ss:$48 sps:$4 sm:$0xff]   ;;  %v5849_v32 = vld [vmem:[#allocation7 + $0x13c] ss:$48 sps:$4 sm:$0xff]  }
  0x95   :  { %2001 = vmatprep.subr.bf16.mxu1 %v5756_v31  ;;  %v5846_v31 = vld [vmem:[#allocation7 + $0x434] ss:$48 sps:$4 sm:$0xff]  }
  0x97   :  { %2029 = vmatpush1.bf16.msra.mxu0 %v5757_v34  ;;  %v5847_v34 = vld [vmem:[#allocation7 + $0x138] ss:$48 sps:$4 sm:$0xff]  }
  0x98   :  { %2002 = vmatpush2.bf16.msra.mxu1 %v5754_v33  ;;  %2030 = vmatprep.subr.bf16.mxu0 %v5765_v36  ;;  %v5844_v33 = vld [vmem:[#allocation7 + $0x430] ss:$48 sps:$4 sm:$0xff]   ;;  %v5855_v36 = vld [vmem:[#allocation7 + $0xdc] ss:$48 sps:$4 sm:$0xff]  }
  0x99   :  { %2003 = vmatprep.subr.bf16.mxu1 %v5762_v35  ;;  %v5852_v35 = vld [vmem:[#allocation7 + $0x3d4] ss:$48 sps:$4 sm:$0xff]  }
  0x9b   :  { %2031 = vmatpush1.bf16.msra.mxu0 %v5763_v39  ;;  %v5853_v39 = vld [vmem:[#allocation7 + $0xd8] ss:$48 sps:$4 sm:$0xff]  }
  0x9c   :  { %2004 = vmatpush2.bf16.msra.mxu1 %v5760_v38  ;;  %2032 = vmatprep.subr.bf16.mxu0 %v5771_v41  ;;  %v5850_v38 = vld [vmem:[#allocation7 + $0x3d0] ss:$48 sps:$4 sm:$0xff]   ;;  %v5861_v41 = vld [vmem:[#allocation7 + $0x7c] ss:$48 sps:$4 sm:$0xff]  }
  0x9d   :  { %2005 = vmatprep.subr.bf16.mxu1 %v5768_v40  ;;  %v5858_v40 = vld [vmem:[#allocation7 + $0x374] ss:$48 sps:$4 sm:$0xff]  }
  0x9f   :  { %2033 = vmatpush1.bf16.msra.mxu0 %v5769_v43  ;;  %v5859_v43 = vld [vmem:[#allocation7 + $0x78] ss:$48 sps:$4 sm:$0xff]  }
  0xa0   :  { %2006 = vmatpush2.bf16.msra.mxu1 %v5766_v42  ;;  %2061 = vmatprep.subr.bf16.mxu0 %v5774_v44  ;;  %v5856_v42 = vld [vmem:[#allocation7 + $0x370] ss:$48 sps:$4 sm:$0xff]   ;;  %v5864_v44 = vld [vmem:[#allocation7 + $0x314] ss:$48 sps:$4 sm:$0xff]  }
  0xa1   :  { %2104 = vmatprep.subr.bf16.mxu1 %v5777_v45  ;;  %v5867_v45 = vld [vmem:[#allocation7 + $0x1c] ss:$48 sps:$4 sm:$0xff]  }
  0xa2   :  { %2051 = vmatmul.mubr.bf16.vlgmr.msra.gmra.mxu0 %v6640_v37 }
  0xa3   :  { %2008 = vmatmul.mubr.bf16.vlgmr.msra.gmra.mxu1 %v6647_v12  ;;  %2062 = vmatpush1.bf16.msra.mxu0 %v5772_v46  ;;  %v5862_v46 = vld [vmem:[#allocation7 + $0x310] ss:$48 sps:$4 sm:$0xff]  }
  0xa4   :  { %2105 = vmatpush1.bf16.msra.mxu1 %v5775_v47  ;;  %2063 = vmatprep.subr.bf16.mxu0 %v5780_v48  ;;  %v5865_v47 = vld [vmem:[#allocation7 + $0x18] ss:$48 sps:$4 sm:$0xff]   ;;  %v5870_v48 = vld [vmem:[#allocation7 + $0x5bc] ss:$48 sps:$4 sm:$0xff]  }
  0xa5   :  { %2106 = vmatprep.subr.bf16.mxu1 %v5783_v49  ;;  %2136 = vmatprep.mubr.bf16.mxu1 %v6584_v0  ;;  %v5873_v49 = vld [vmem:[#allocation7 + $0x8bc] ss:$48 sps:$4 sm:$0xff]  }
  0xa6   :  { %2093 = vmatprep.mubr.bf16.mxu0 %v6643_v54 }
  0xa7   :  { %2064 = vmatpush1.bf16.msra.mxu0 %v5778_v50  ;;  %v5868_v50 = vld [vmem:[#allocation7 + $0x5b8] ss:$48 sps:$4 sm:$0xff]  }
  0xa8   :  { %2107 = vmatpush1.bf16.msra.mxu1 %v5781_v51  ;;  %2065 = vmatprep.subr.bf16.mxu0 %v5786_v52  ;;  %v5871_v51 = vld [vmem:[#allocation7 + $0x8b8] ss:$48 sps:$4 sm:$0xff]   ;;  %v5876_v52 = vld [vmem:[#allocation7 + $0x55c] ss:$48 sps:$4 sm:$0xff]  }
  0xa9   :  { %2108 = vmatprep.subr.bf16.mxu1 %v5789_v53  ;;  %v5879_v53 = vld [vmem:[#allocation7 + $0x85c] ss:$48 sps:$4 sm:$0xff]  }
  0xab   :  { %2066 = vmatpush1.bf16.msra.mxu0 %v5784_v55  ;;  %v5874_v55 = vld [vmem:[#allocation7 + $0x558] ss:$48 sps:$4 sm:$0xff]  }
  0xac   :  { %2109 = vmatpush1.bf16.msra.mxu1 %v5787_v56  ;;  %2067 = vmatprep.subr.bf16.mxu0 %v5792_v57  ;;  %v5877_v56 = vld [vmem:[#allocation7 + $0x858] ss:$48 sps:$4 sm:$0xff]   ;;  %v5882_v57 = vld [vmem:[#allocation7 + $0x4fc] ss:$48 sps:$4 sm:$0xff]  }
  0xad   :  { %2110 = vmatprep.subr.bf16.mxu1 %v5795_v58  ;;  %v5885_v58 = vld [vmem:[#allocation7 + $0x7fc] ss:$48 sps:$4 sm:$0xff]  }
  0xaf   :  { %2068 = vmatpush1.bf16.msra.mxu0 %v5790_v59  ;;  %v5880_v59 = vld [vmem:[#allocation7 + $0x4f8] ss:$48 sps:$4 sm:$0xff]  }
  0xb0   :  { %2111 = vmatpush1.bf16.msra.mxu1 %v5793_v60  ;;  %2069 = vmatprep.subr.bf16.mxu0 %v5798_v61  ;;  %v5883_v60 = vld [vmem:[#allocation7 + $0x7f8] ss:$48 sps:$4 sm:$0xff]   ;;  %v5888_v61 = vld [vmem:[#allocation7 + $0x49c] ss:$48 sps:$4 sm:$0xff]  }
  0xb1   :  { %2112 = vmatprep.subr.bf16.mxu1 %v5801_v62  ;;  %v5891_v62 = vld [vmem:[#allocation7 + $0x79c] ss:$48 sps:$4 sm:$0xff]  }
  0xb3   :  { %2070 = vmatpush1.bf16.msra.mxu0 %v5796_v63  ;;  %v5886_v63 = vld [vmem:[#allocation7 + $0x498] ss:$48 sps:$4 sm:$0xff]  }
  0xb4   :  { %2113 = vmatpush1.bf16.msra.mxu1 %v5799_v1  ;;  %2071 = vmatprep.subr.bf16.mxu0 %v5804_v2  ;;  %v5889_v1 = vld [vmem:[#allocation7 + $0x798] ss:$48 sps:$4 sm:$0xff]   ;;  %v5894_v2 = vld [vmem:[#allocation7 + $0x43c] ss:$48 sps:$4 sm:$0xff]  }
  0xb5   :  { %2114 = vmatprep.subr.bf16.mxu1 %v5807_v3  ;;  %v5897_v3 = vld [vmem:[#allocation7 + $0x73c] ss:$48 sps:$4 sm:$0xff]  }
  0xb7   :  { %2072 = vmatpush1.bf16.msra.mxu0 %v5802_v4  ;;  %v5892_v4 = vld [vmem:[#allocation7 + $0x438] ss:$48 sps:$4 sm:$0xff]  }
  0xb8   :  { %2115 = vmatpush1.bf16.msra.mxu1 %v5805_v5  ;;  %2073 = vmatprep.subr.bf16.mxu0 %v5810_v6  ;;  %v5895_v5 = vld [vmem:[#allocation7 + $0x738] ss:$48 sps:$4 sm:$0xff]   ;;  %v5900_v6 = vld [vmem:[#allocation7 + $0x3dc] ss:$48 sps:$4 sm:$0xff]  }
  0xb9   :  { %2116 = vmatprep.subr.bf16.mxu1 %v5813_v7  ;;  %v5903_v7 = vld [vmem:[#allocation7 + $0x6dc] ss:$48 sps:$4 sm:$0xff]  }
  0xbb   :  { %2074 = vmatpush1.bf16.msra.mxu0 %v5808_v8  ;;  %v5898_v8 = vld [vmem:[#allocation7 + $0x3d8] ss:$48 sps:$4 sm:$0xff]  }
  0xbc   :  { %2117 = vmatpush1.bf16.msra.mxu1 %v5811_v9  ;;  %2075 = vmatprep.subr.bf16.mxu0 %v5816_v10  ;;  %v5901_v9 = vld [vmem:[#allocation7 + $0x6d8] ss:$48 sps:$4 sm:$0xff]   ;;  %v5906_v10 = vld [vmem:[#allocation7 + $0x37c] ss:$48 sps:$4 sm:$0xff]  }
  0xbd   :  { %2118 = vmatprep.subr.bf16.mxu1 %v5819_v11  ;;  %v5909_v11 = vld [vmem:[#allocation7 + $0x67c] ss:$48 sps:$4 sm:$0xff]  }
  0xbf   :  { %2076 = vmatpush1.bf16.msra.mxu0 %v5814_v13  ;;  %v5904_v13 = vld [vmem:[#allocation7 + $0x378] ss:$48 sps:$4 sm:$0xff]  }
  0xc0   :  { %2119 = vmatpush1.bf16.msra.mxu1 %v5817_v14  ;;  %2077 = vmatprep.subr.bf16.mxu0 %v5822_v15  ;;  %v5907_v14 = vld [vmem:[#allocation7 + $0x678] ss:$48 sps:$4 sm:$0xff]   ;;  %v5912_v15 = vld [vmem:[#allocation7 + $0x31c] ss:$48 sps:$4 sm:$0xff]  }
  0xc1   :  { %2147 = vmatprep.subr.bf16.mxu1 %v5825_v16  ;;  %v5915_v16 = vld [vmem:[#allocation7 + $0x61c] ss:$48 sps:$4 sm:$0xff]  }
  0xc3   :  { %2137 = vmatmul.mubr.bf16.vlgmr.msra.gmra.mxu1 %v6640_v37  ;;  %2078 = vmatpush2.bf16.msra.mxu0 %v5820_v17  ;;  %v5910_v17 = vld [vmem:[#allocation7 + $0x318] ss:$48 sps:$4 sm:$0xff]  }
  0xc4   :  { %2148 = vmatpush1.bf16.msra.mxu1 %v5823_v18  ;;  %2079 = vmatprep.subr.bf16.mxu0 %v5828_v19  ;;  %v5913_v18 = vld [vmem:[#allocation7 + $0x618] ss:$48 sps:$4 sm:$0xff]   ;;  %v5918_v19 = vld [vmem:[#allocation7 + $0x2c4] ss:$48 sps:$4 sm:$0xff]  }
  0xc5   :  { %2149 = vmatprep.subr.bf16.mxu1 %v5831_v20  ;;  %2179 = vmatprep.mubr.bf16.mxu1 %v6643_v54  ;;  %v5921_v20 = vld [vmem:[#allocation7 + $0x8c4] ss:$48 sps:$4 sm:$0xff]  }
  0xc7   :  { %2080 = vmatpush2.bf16.msra.mxu0 %v5826_v21  ;;  %v5916_v21 = vld [vmem:[#allocation7 + $0x2c0] ss:$48 sps:$4 sm:$0xff]  }
  0xc8   :  { %2150 = vmatpush1.bf16.msra.mxu1 %v5829_v22  ;;  %2081 = vmatprep.subr.bf16.mxu0 %v5834_v23  ;;  %v5919_v22 = vld [vmem:[#allocation7 + $0x8c0] ss:$48 sps:$4 sm:$0xff]   ;;  %v5924_v23 = vld [vmem:[#allocation7 + $0x264] ss:$48 sps:$4 sm:$0xff]  }
  0xc9   :  { %2151 = vmatprep.subr.bf16.mxu1 %v5837_v24  ;;  %v5927_v24 = vld [vmem:[#allocation7 + $0x864] ss:$48 sps:$4 sm:$0xff]  }
  0xcb   :  { %2082 = vmatpush2.bf16.msra.mxu0 %v5832_v25  ;;  %v5922_v25 = vld [vmem:[#allocation7 + $0x260] ss:$48 sps:$4 sm:$0xff]  }
  0xcc   :  { %2152 = vmatpush1.bf16.msra.mxu1 %v5835_v26  ;;  %2083 = vmatprep.subr.bf16.mxu0 %v5840_v27  ;;  %v5925_v26 = vld [vmem:[#allocation7 + $0x860] ss:$48 sps:$4 sm:$0xff]   ;;  %v5930_v27 = vld [vmem:[#allocation7 + $0x204] ss:$48 sps:$4 sm:$0xff]  }
  0xcd   :  { %2153 = vmatprep.subr.bf16.mxu1 %v5843_v28  ;;  %v5933_v28 = vld [vmem:[#allocation7 + $0x804] ss:$48 sps:$4 sm:$0xff]  }
  0xcf   :  { %2084 = vmatpush2.bf16.msra.mxu0 %v5838_v29  ;;  %v5928_v29 = vld [vmem:[#allocation7 + $0x200] ss:$48 sps:$4 sm:$0xff]  }
  0xd0   :  { %2154 = vmatpush1.bf16.msra.mxu1 %v5841_v30  ;;  %2085 = vmatprep.subr.bf16.mxu0 %v5846_v31  ;;  %v5931_v30 = vld [vmem:[#allocation7 + $0x800] ss:$48 sps:$4 sm:$0xff]   ;;  %v5936_v31 = vld [vmem:[#allocation7 + $0x1a4] ss:$48 sps:$4 sm:$0xff]  }
  0xd1   :  { %2155 = vmatprep.subr.bf16.mxu1 %v5849_v32  ;;  %v5939_v32 = vld [vmem:[#allocation7 + $0x7a4] ss:$48 sps:$4 sm:$0xff]  }
  0xd3   :  { %2086 = vmatpush2.bf16.msra.mxu0 %v5844_v33  ;;  %v5934_v33 = vld [vmem:[#allocation7 + $0x1a0] ss:$48 sps:$4 sm:$0xff]  }
  0xd4   :  { %2156 = vmatpush1.bf16.msra.mxu1 %v5847_v34  ;;  %2087 = vmatprep.subr.bf16.mxu0 %v5852_v35  ;;  %v5937_v34 = vld [vmem:[#allocation7 + $0x7a0] ss:$48 sps:$4 sm:$0xff]   ;;  %v5942_v35 = vld [vmem:[#allocation7 + $0x144] ss:$48 sps:$4 sm:$0xff]  }
  0xd5   :  { %2157 = vmatprep.subr.bf16.mxu1 %v5855_v36  ;;  %v5945_v36 = vld [vmem:[#allocation7 + $0x744] ss:$48 sps:$4 sm:$0xff]  }
  0xd7   :  { %2088 = vmatpush2.bf16.msra.mxu0 %v5850_v38  ;;  %v5940_v38 = vld [vmem:[#allocation7 + $0x140] ss:$48 sps:$4 sm:$0xff]  }
  0xd8   :  { %2158 = vmatpush1.bf16.msra.mxu1 %v5853_v39  ;;  %2089 = vmatprep.subr.bf16.mxu0 %v5858_v40  ;;  %v5943_v39 = vld [vmem:[#allocation7 + $0x740] ss:$48 sps:$4 sm:$0xff]   ;;  %v5948_v40 = vld [vmem:[#allocation7 + $0xe4] ss:$48 sps:$4 sm:$0xff]  }
  0xd9   :  { %2159 = vmatprep.subr.bf16.mxu1 %v5861_v41  ;;  %v5951_v41 = vld [vmem:[#allocation7 + $0x6e4] ss:$48 sps:$4 sm:$0xff]  }
  0xdb   :  { %2090 = vmatpush2.bf16.msra.mxu0 %v5856_v42  ;;  %v5946_v42 = vld [vmem:[#allocation7 + $0xe0] ss:$48 sps:$4 sm:$0xff]  }
  0xdc   :  { %2160 = vmatpush1.bf16.msra.mxu1 %v5859_v43  ;;  %2091 = vmatprep.subr.bf16.mxu0 %v5864_v44  ;;  %v5949_v43 = vld [vmem:[#allocation7 + $0x6e0] ss:$48 sps:$4 sm:$0xff]   ;;  %v5954_v44 = vld [vmem:[#allocation7 + $0x84] ss:$48 sps:$4 sm:$0xff]  }
  0xdd   :  { %2161 = vmatprep.subr.bf16.mxu1 %v5867_v45  ;;  %v5957_v45 = vld [vmem:[#allocation7 + $0x684] ss:$48 sps:$4 sm:$0xff]  }
  0xdf   :  { %2092 = vmatpush2.bf16.msra.mxu0 %v5862_v46  ;;  %v5952_v46 = vld [vmem:[#allocation7 + $0x80] ss:$48 sps:$4 sm:$0xff]  }
  0xe0   :  { %2162 = vmatpush1.bf16.msra.mxu1 %v5865_v47  ;;  %2190 = vmatprep.subr.bf16.mxu0 %v5873_v49  ;;  %v5955_v47 = vld [vmem:[#allocation7 + $0x680] ss:$48 sps:$4 sm:$0xff]   ;;  %v5963_v49 = vld [vmem:[#allocation7 + $0x624] ss:$48 sps:$4 sm:$0xff]  }
  0xe1   :  { %2163 = vmatprep.subr.bf16.mxu1 %v5870_v48  ;;  %v5960_v48 = vld [vmem:[#allocation7 + $0x24] ss:$48 sps:$4 sm:$0xff]  }
  0xe2   :  { %2094 = vmatmul.mubr.bf16.vlgmr.msra.gmra.mxu0 %v6647_v12 }
  0xe3   :  { %2191 = vmatpush1.bf16.msra.mxu0 %v5871_v51  ;;  %2222 = vmatprep.mubr.bf16.mxu0 %v6584_v0  ;;  %v5961_v51 = vld [vmem:[#allocation7 + $0x620] ss:$48 sps:$4 sm:$0xff]  }
  0xe4   :  { %2164 = vmatpush2.bf16.msra.mxu1 %v5868_v50  ;;  %2192 = vmatprep.subr.bf16.mxu0 %v5879_v53  ;;  %v5958_v50 = vld [vmem:[#allocation7 + $0x20] ss:$48 sps:$4 sm:$0xff]   ;;  %v5969_v53 = vld [vmem:[#allocation7 + $0x2cc] ss:$48 sps:$4 sm:$0xff]  }
  0xe5   :  { %2165 = vmatprep.subr.bf16.mxu1 %v5876_v52  ;;  %v5966_v52 = vld [vmem:[#allocation7 + $0x5c4] ss:$48 sps:$4 sm:$0xff]  }
  0xe7   :  { %2193 = vmatpush1.bf16.msra.mxu0 %v5877_v56  ;;  %v5967_v56 = vld [vmem:[#allocation7 + $0x2c8] ss:$48 sps:$4 sm:$0xff]  }
  0xe8   :  { %2166 = vmatpush2.bf16.msra.mxu1 %v5874_v55  ;;  %2194 = vmatprep.subr.bf16.mxu0 %v5885_v58  ;;  %v5964_v55 = vld [vmem:[#allocation7 + $0x5c0] ss:$48 sps:$4 sm:$0xff]   ;;  %v5975_v58 = vld [vmem:[#allocation7 + $0x26c] ss:$48 sps:$4 sm:$0xff]  }
  0xe9   :  { %2167 = vmatprep.subr.bf16.mxu1 %v5882_v57  ;;  %v5972_v57 = vld [vmem:[#allocation7 + $0x564] ss:$48 sps:$4 sm:$0xff]  }
  0xeb   :  { %2195 = vmatpush1.bf16.msra.mxu0 %v5883_v60  ;;  %v5973_v60 = vld [vmem:[#allocation7 + $0x268] ss:$48 sps:$4 sm:$0xff]  }
  0xec   :  { %2168 = vmatpush2.bf16.msra.mxu1 %v5880_v59  ;;  %2196 = vmatprep.subr.bf16.mxu0 %v5891_v62  ;;  %v5970_v59 = vld [vmem:[#allocation7 + $0x560] ss:$48 sps:$4 sm:$0xff]   ;;  %v5981_v62 = vld [vmem:[#allocation7 + $0x20c] ss:$48 sps:$4 sm:$0xff]  }
  0xed   :  { %2169 = vmatprep.subr.bf16.mxu1 %v5888_v61  ;;  %v5978_v61 = vld [vmem:[#allocation7 + $0x504] ss:$48 sps:$4 sm:$0xff]  }
  0xef   :  { %2197 = vmatpush1.bf16.msra.mxu0 %v5889_v1  ;;  %v5979_v1 = vld [vmem:[#allocation7 + $0x208] ss:$48 sps:$4 sm:$0xff]  }
  0xf0   :  { %2170 = vmatpush2.bf16.msra.mxu1 %v5886_v63  ;;  %2198 = vmatprep.subr.bf16.mxu0 %v5897_v3  ;;  %v5976_v63 = vld [vmem:[#allocation7 + $0x500] ss:$48 sps:$4 sm:$0xff]   ;;  %v5987_v3 = vld [vmem:[#allocation7 + $0x1ac] ss:$48 sps:$4 sm:$0xff]  }
  0xf1   :  { %2171 = vmatprep.subr.bf16.mxu1 %v5894_v2  ;;  %v5984_v2 = vld [vmem:[#allocation7 + $0x4a4] ss:$48 sps:$4 sm:$0xff]  }
  0xf3   :  { %2199 = vmatpush1.bf16.msra.mxu0 %v5895_v5  ;;  %v5985_v5 = vld [vmem:[#allocation7 + $0x1a8] ss:$48 sps:$4 sm:$0xff]  }
  0xf4   :  { %2172 = vmatpush2.bf16.msra.mxu1 %v5892_v4  ;;  %2200 = vmatprep.subr.bf16.mxu0 %v5903_v7  ;;  %v5982_v4 = vld [vmem:[#allocation7 + $0x4a0] ss:$48 sps:$4 sm:$0xff]   ;;  %v5993_v7 = vld [vmem:[#allocation7 + $0x14c] ss:$48 sps:$4 sm:$0xff]  }
  0xf5   :  { %2173 = vmatprep.subr.bf16.mxu1 %v5900_v6  ;;  %v5990_v6 = vld [vmem:[#allocation7 + $0x444] ss:$48 sps:$4 sm:$0xff]  }
  0xf7   :  { %2201 = vmatpush1.bf16.msra.mxu0 %v5901_v9  ;;  %v5996_v9 = vld [vmem:[#allocation7 + $0x3e4] ss:$48 sps:$4 sm:$0xff]  }
  0xf8   :  { %2174 = vmatpush2.bf16.msra.mxu1 %v5898_v8  ;;  %2202 = vmatprep.subr.bf16.mxu0 %v5909_v11  ;;  %v5988_v8 = vld [vmem:[#allocation7 + $0x440] ss:$48 sps:$4 sm:$0xff]  }
  0xf9   :  { %2175 = vmatprep.subr.bf16.mxu1 %v5906_v10  ;;  %v5999_v10 = vld [vmem:[#allocation7 + $0xec] ss:$48 sps:$4 sm:$0xff]   ;;  %v5994_v11 = vld [vmem:[#allocation7 + $0x3e0] ss:$48 sps:$4 sm:$0xff]  }
  0xfb   :  { %2203 = vmatpush1.bf16.msra.mxu0 %v5907_v14  ;;  %v6002_v14 = vld [vmem:[#allocation7 + $0x384] ss:$48 sps:$4 sm:$0xff]  }
  0xfc   :  { %2176 = vmatpush2.bf16.msra.mxu1 %v5904_v13  ;;  %2204 = vmatprep.subr.bf16.mxu0 %v5915_v16  ;;  %v5997_v13 = vld [vmem:[#allocation7 + $0xe8] ss:$48 sps:$4 sm:$0xff]   ;;  %v6005_v16 = vld [vmem:[#allocation7 + $0x8c] ss:$48 sps:$4 sm:$0xff]  }
  0xfd   :  { %2177 = vmatprep.subr.bf16.mxu1 %v5912_v15  ;;  %v389_v15 = vlaneseq }
  0xff   :  { %2205 = vmatpush1.bf16.msra.mxu0 %v5913_v18  ;;  %v6003_v18 = vld [vmem:[#allocation7 + $0x88] ss:$48 sps:$4 sm:$0xff]  }
 0x100   :  { %2178 = vmatpush2.bf16.msra.mxu1 %v5910_v17  ;;  %2233 = vmatprep.subr.bf16.mxu0 %v5918_v19  ;;  %v6000_v17 = vld [vmem:[#allocation7 + $0x380] ss:$48 sps:$4 sm:$0xff]   ;;  %v6008_v19 = vld [vmem:[#allocation7 + $0x324] ss:$48 sps:$4 sm:$0xff]  }
 0x101   :  { %2276 = vmatprep.subr.bf16.mxu1 %v5921_v20  ;;  %v6665_v20 = vshrl.u32 %v389_v15, 7  ;;  %v6054_v15 = vld [vmem:[#allocation7 + $0x328] ss:$48 sps:$4 sm:$0xff]  }
 0x102   :  { %2223 = vmatmul.mubr.bf16.vlgmr.msra.gmra.mxu0 %v6640_v37 }
 0x103   :  { %2180 = vmatmul.mubr.bf16.vlgmr.msra.gmra.mxu1 %v6647_v12  ;;  %2234 = vmatpush1.bf16.msra.mxu0 %v5916_v21  ;;  %v6011_v21 = vld [vmem:[#allocation7 + $0x2c] ss:$48 sps:$4 sm:$0xff]  }
 0x104   :  { %2277 = vmatpush1.bf16.msra.mxu1 %v5919_v22  ;;  %2235 = vmatprep.subr.bf16.mxu0 %v5924_v23  ;;  %v6006_v22 = vld [vmem:[#allocation7 + $0x320] ss:$48 sps:$4 sm:$0xff]   ;;  %v6009_v23 = vld [vmem:[#allocation7 + $0x28] ss:$48 sps:$4 sm:$0xff]  }
 0x105   :  { %2278 = vmatprep.subr.bf16.mxu1 %v5927_v24  ;;  %2308 = vmatprep.mubr.bf16.mxu1 %v6584_v0  ;;  %v6667_v24 = vld [vmem:[#allocation9] sm:$0xff] }
 0x106   :  { %2265 = vmatprep.mubr.bf16.mxu0 %v6643_v54 }
 0x107   :  { %2236 = vmatpush1.bf16.msra.mxu0 %v5922_v25  ;;  %v6670_v25 = vsub.s32 0, %v6665_v20 }
 0x108   :  { %2279 = vmatpush1.bf16.msra.mxu1 %v5925_v26  ;;  %2237 = vmatprep.subr.bf16.mxu0 %v5930_v27  ;;  %v6014_v26 = vld [vmem:[#allocation7 + $0x5cc] ss:$48 sps:$4 sm:$0xff]  }
 0x109   :  { %2280 = vmatprep.subr.bf16.mxu1 %v5933_v28  ;;  %v6017_v27 = vld [vmem:[#allocation7 + $0x8cc] ss:$48 sps:$4 sm:$0xff]   ;;  %v6012_v28 = vld [vmem:[#allocation7 + $0x5c8] ss:$48 sps:$4 sm:$0xff]  }
 0x10b   :  { %2238 = vmatpush1.bf16.msra.mxu0 %v5928_v29  ;;  %v392_v29 = vrot.slane %v6667_v24, %v6670_v25 }
 0x10c   :  { %2281 = vmatpush1.bf16.msra.mxu1 %v5931_v30  ;;  %2239 = vmatprep.subr.bf16.mxu0 %v5936_v31  ;;  %v6015_v30 = vld [vmem:[#allocation7 + $0x8c8] ss:$48 sps:$4 sm:$0xff]   ;;  %v6020_v31 = vld [vmem:[#allocation7 + $0x56c] ss:$48 sps:$4 sm:$0xff]  }
 0x10d   :  { %2282 = vmatprep.subr.bf16.mxu1 %v5939_v32 }
 0x10f   :  { %2240 = vmatpush1.bf16.msra.mxu0 %v5934_v33  ;;  %v6023_v33 = vld [vmem:[#allocation7 + $0x86c] ss:$48 sps:$4 sm:$0xff]  }
 0x110   :  { %2283 = vmatpush1.bf16.msra.mxu1 %v5937_v34  ;;  %2241 = vmatprep.subr.bf16.mxu0 %v5942_v35  ;;  %v6018_v35 = vld [vmem:[#allocation7 + $0x568] ss:$48 sps:$4 sm:$0xff]  }
 0x111   :  { %2284 = vmatprep.subr.bf16.mxu1 %v5945_v36  ;;  %v6021_v36 = vld [vmem:[#allocation7 + $0x868] ss:$48 sps:$4 sm:$0xff]  }
 0x113   :  { %2242 = vmatpush1.bf16.msra.mxu0 %v5940_v38 }
 0x114   :  { %2285 = vmatpush1.bf16.msra.mxu1 %v5943_v39  ;;  %2243 = vmatprep.subr.bf16.mxu0 %v5948_v40  ;;  %v6026_v39 = vld [vmem:[#allocation7 + $0x50c] ss:$48 sps:$4 sm:$0xff]  }
 0x115   :  { %2286 = vmatprep.subr.bf16.mxu1 %v5951_v41  ;;  %v6029_v40 = vld [vmem:[#allocation7 + $0x80c] ss:$48 sps:$4 sm:$0xff]  }
 0x117   :  { %2244 = vmatpush1.bf16.msra.mxu0 %v5946_v42 }
 0x118   :  { %2287 = vmatpush1.bf16.msra.mxu1 %v5949_v43  ;;  %2245 = vmatprep.subr.bf16.mxu0 %v5954_v44  ;;  %v6024_v44 = vld [vmem:[#allocation7 + $0x508] ss:$48 sps:$4 sm:$0xff]  }
 0x119   :  { %2288 = vmatprep.subr.bf16.mxu1 %v5957_v45  ;;  %v6027_v45 = vld [vmem:[#allocation7 + $0x808] ss:$48 sps:$4 sm:$0xff]  }
 0x11b   :  { %2246 = vmatpush1.bf16.msra.mxu0 %v5952_v46 }
 0x11c   :  { %2289 = vmatpush1.bf16.msra.mxu1 %v5955_v47  ;;  %2247 = vmatprep.subr.bf16.mxu0 %v5960_v48  ;;  %v6032_v47 = vld [vmem:[#allocation7 + $0x4ac] ss:$48 sps:$4 sm:$0xff]  }
 0x11d   :  { %2290 = vmatprep.subr.bf16.mxu1 %v5963_v49  ;;  %v6035_v48 = vld [vmem:[#allocation7 + $0x7ac] ss:$48 sps:$4 sm:$0xff]  }
 0x11f   :  { %2248 = vmatpush1.bf16.msra.mxu0 %v5958_v50 }
 0x120   :  { %2291 = vmatpush1.bf16.msra.mxu1 %v5961_v51  ;;  %2249 = vmatprep.subr.bf16.mxu0 %v5966_v52  ;;  %v6030_v52 = vld [vmem:[#allocation7 + $0x4a8] ss:$48 sps:$4 sm:$0xff]  }
 0x121   :  { %2319 = vmatprep.subr.bf16.mxu1 %v5969_v53  ;;  %v6033_v53 = vld [vmem:[#allocation7 + $0x7a8] ss:$48 sps:$4 sm:$0xff]  }
 0x123   :  { %2309 = vmatmul.mubr.bf16.vlgmr.msra.gmra.mxu1 %v6640_v37  ;;  %2250 = vmatpush2.bf16.msra.mxu0 %v5964_v55  ;;  %v1966_v32 = vpop.f32.mrf.mxu1  ;;  %v6038_v55 = vld [vmem:[#allocation7 + $0x44c] ss:$48 sps:$4 sm:$0xff]  }
 0x124   :  { %2320 = vmatpush1.bf16.msra.mxu1 %v5967_v56  ;;  %2251 = vmatprep.subr.bf16.mxu0 %v5972_v57  ;;  %v6041_v56 = vld [vmem:[#allocation7 + $0x74c] ss:$48 sps:$4 sm:$0xff]  }
 0x125   :  { %2321 = vmatprep.subr.bf16.mxu1 %v5975_v58  ;;  %2351 = vmatprep.mubr.bf16.mxu1 %v6643_v54  ;;  %v5991_v54 = vld [vmem:[#allocation7 + $0x148] ss:$48 sps:$4 sm:$0xff]   ;;  %v1968_v41 = vpop.f32.mrf.mxu1 }
 0x127   :  { %2252 = vmatpush2.bf16.msra.mxu0 %v5970_v59  ;;  %v1970_v50 = vpop.f32.mrf.mxu1  ;;  %v6036_v59 = vld [vmem:[#allocation7 + $0x448] ss:$48 sps:$4 sm:$0xff]  }
 0x128   :  { %2322 = vmatpush1.bf16.msra.mxu1 %v5973_v60  ;;  %2253 = vmatprep.subr.bf16.mxu0 %v5978_v61  ;;  %v6039_v60 = vld [vmem:[#allocation7 + $0x748] ss:$48 sps:$4 sm:$0xff]   ;;  %v6044_v61 = vld [vmem:[#allocation7 + $0x3ec] ss:$48 sps:$4 sm:$0xff]  }
 0x129   :  { %2323 = vmatprep.subr.bf16.mxu1 %v5981_v62  ;;  %v6047_v62 = vld [vmem:[#allocation7 + $0x6ec] ss:$48 sps:$4 sm:$0xff]  }
 0x12b   :  { %2254 = vmatpush2.bf16.msra.mxu0 %v5976_v63  ;;  %v6679_v63 = vsub.s32 1, %v6665_v20 }
 0x12c   :  { %2324 = vmatpush1.bf16.msra.mxu1 %v5979_v1  ;;  %2255 = vmatprep.subr.bf16.mxu0 %v5984_v2  ;;  %v6042_v1 = vld [vmem:[#allocation7 + $0x3e8] ss:$48 sps:$4 sm:$0xff]  }
 0x12d   :  { %2325 = vmatprep.subr.bf16.mxu1 %v5987_v3  ;;  %v6045_v3 = vld [vmem:[#allocation7 + $0x6e8] ss:$48 sps:$4 sm:$0xff]  }
 0x12f   :  { %2256 = vmatpush2.bf16.msra.mxu0 %v5982_v4  ;;  %v396_v4 = vrot.slane %v6667_v24, %v6679_v63 }
 0x130   :  { %2326 = vmatpush1.bf16.msra.mxu1 %v5985_v5  ;;  %2257 = vmatprep.subr.bf16.mxu0 %v5990_v6  ;;  %v6050_v5 = vld [vmem:[#allocation7 + $0x38c] ss:$48 sps:$4 sm:$0xff]  }
 0x131   :  { %2327 = vmatprep.subr.bf16.mxu1 %v5993_v7  ;;  %v6053_v6 = vld [vmem:[#allocation7 + $0x68c] ss:$48 sps:$4 sm:$0xff]  }
 0x133   :  { %2258 = vmatpush2.bf16.msra.mxu0 %v5988_v8  ;;  %v6048_v8 = vld [vmem:[#allocation7 + $0x388] ss:$48 sps:$4 sm:$0xff]  }
 0x134   :  { %2328 = vmatpush1.bf16.msra.mxu1 %v5991_v54  ;;  %2259 = vmatprep.subr.bf16.mxu0 %v5996_v9  ;;  %v6051_v54 = vld [vmem:[#allocation7 + $0x688] ss:$48 sps:$4 sm:$0xff]  }
 0x135   :  { %2329 = vmatprep.subr.bf16.mxu1 %v5999_v10  ;;  %v1972_v10 = vpop.f32.mrf.mxu1 }
 0x137   :  { %2260 = vmatpush2.bf16.msra.mxu0 %v5994_v11  ;;  %v6056_v11 = vld [vmem:[#allocation7 + $0x32c] ss:$48 sps:$4 sm:$0xff]  }
 0x138   :  { %2330 = vmatpush1.bf16.msra.mxu1 %v5997_v13  ;;  %2261 = vmatprep.subr.bf16.mxu0 %v6002_v14  ;;  %v6059_v13 = vld [vmem:[#allocation7 + $0x62c] ss:$48 sps:$4 sm:$0xff]  }
 0x139   :  { %2331 = vmatprep.subr.bf16.mxu1 %v6005_v16  ;;  %v6057_v16 = vld [vmem:[#allocation7 + $0x628] ss:$48 sps:$4 sm:$0xff]  }
 0x13b   :  { %2262 = vmatpush2.bf16.msra.mxu0 %v6000_v17 }
 0x13c   :  { %2332 = vmatpush1.bf16.msra.mxu1 %v6003_v18  ;;  %2263 = vmatprep.subr.bf16.mxu0 %v6008_v19  ;;  %v6062_v18 = vld [vmem:[#allocation10 + $0xac] ss:$12 sps:$4 sm:$0xff]  }
 0x13d   :  { %2333 = vmatprep.subr.bf16.mxu1 %v6011_v21  ;;  %v6065_v19 = vld [vmem:[#allocation10 + $0x22c] ss:$12 sps:$4 sm:$0xff]  }
 0x13f   :  { %2264 = vmatpush2.bf16.msra.mxu0 %v6006_v22  ;;  %v6060_v22 = vld [vmem:[#allocation10 + $0xa8] ss:$12 sps:$4 sm:$0xff]  }
 0x140   :  { %2334 = vmatpush1.bf16.msra.mxu1 %v6009_v23  ;;  %2362 = vmatprep.subr.bf16.mxu0 %v6017_v27  ;;  %v403_v23 = vsub.s32 3, %v6665_v20  ;;  %v6068_v27 = vld [vmem:[#allocation10 + $0x94] ss:$12 sps:$4 sm:$0xff]  }
 0x141   :  { %2335 = vmatprep.subr.bf16.mxu1 %v6014_v26  ;;  %v6063_v26 = vld [vmem:[#allocation10 + $0x228] ss:$12 sps:$4 sm:$0xff]  }
 0x142   :  { %v1923_v34 = vpop.f32.mrf.mxu0  ;;  %2266 = vmatmul.mubr.bf16.vlgmr.msra.gmra.mxu0 %v6647_v12 }
 0x143   :  { %v1924_v38 = vadd.f32 %v1923_v34, %v392_v29  ;;  %2363 = vmatpush1.bf16.msra.mxu0 %v6015_v30  ;;  %2394 = vmatprep.mubr.bf16.mxu0 %v6584_v0  ;;  %v404_v30 = vrot.slane %v6667_v24, %v403_v23 }
 0x144   :  { %2336 = vmatpush2.bf16.msra.mxu1 %v6012_v28  ;;  %v1925_v42 = vpop.f32.mrf.mxu0  ;;  %2364 = vmatprep.subr.bf16.mxu0 %v6023_v33 }
 0x145   :  { %2337 = vmatprep.subr.bf16.mxu1 %v6020_v31  ;;  %v1967_v43 = vadd.f32 %v1966_v32, %v1924_v38  ;;  %v1926_v9 = vadd.f32 %v1925_v42, %v396_v4  ;;  %v6066_v31 = vld [vmem:[#allocation10 + $0x90] ss:$12 sps:$4 sm:$0xff]   ;;  %v6071_v32 = vld [vmem:[#allocation10 + $0x214] ss:$12 sps:$4 sm:$0xff]  }
 0x146   :  { %v1927_v46 = vpop.f32.mrf.mxu0  ;;  %v6077_v42 = vld [vmem:[#allocation10 + $0x1fc] ss:$12 sps:$4 sm:$0xff]  }
 0x147   :  { %v1928_v49 = vadd.f32 %v1927_v46, %v392_v29  ;;  %2365 = vmatpush1.bf16.msra.mxu0 %v6021_v36  ;;  %v2405_v57 = vmax.f32 %v1967_v43, 0.0  ;;  %v1969_v17 = vadd.f32 %v1968_v41, %v1926_v9  ;;  %v6074_v36 = vld [vmem:[#allocation10 + $0x7c] ss:$12 sps:$4 sm:$0xff]   ;;  %v6072_v41 = vld [vmem:[#allocation10 + $0x78] ss:$12 sps:$4 sm:$0xff]  }
 0x148   :  { %2338 = vmatpush2.bf16.msra.mxu1 %v6018_v35  ;;  %2366 = vmatprep.subr.bf16.mxu0 %v6029_v40  ;;  %v1929_v2 = vpop.f32.mrf.mxu0  ;;  %v6069_v35 = vld [vmem:[#allocation10 + $0x210] ss:$12 sps:$4 sm:$0xff]   ;;  %v6105_v9 = vld [vmem:[#allocation10 + $0x180] ss:$12 sps:$4 sm:$0xff]  }
 0x149   :  { %2339 = vmatprep.subr.bf16.mxu1 %v6026_v39  ;;  %v1971_v51 = vadd.f32 %v1970_v50, %v1928_v49  ;;  %v1930_v7 = vadd.f32 %v1929_v2, %v396_v4  ;;  %v2406_v28 = vmax.f32 %v1969_v17, 0.0  ;;  %v6080_v46 = vld [vmem:[#allocation10 + $0x64] ss:$12 sps:$4 sm:$0xff]   ;;  %v6078_v49 = vld [vmem:[#allocation10 + $0x60] ss:$12 sps:$4 sm:$0xff]  }
 0x14a   :  { %v6093_v2 = vld [vmem:[#allocation10 + $0x1b0] ss:$12 sps:$4 sm:$0xff]   ;;  %v6119_v17 = vld [vmem:[#allocation10 + $0x2d4] ss:$12 sps:$4 sm:$0xff]  }
 0x14b   :  { %v2417_v58 = vmax.f32 %v1971_v51, 0.0  ;;  %2367 = vmatpush1.bf16.msra.mxu0 %v6027_v45  ;;  %v1973_v14 = vadd.f32 %v1972_v10, %v1930_v7  ;;  %v6081_v51 = vld [vmem:[#allocation10 + $0x1e0] ss:$12 sps:$4 sm:$0xff]   ;;  %v6101_v4 = vld [vmem:[#allocation10 + $0x19c] ss:$12 sps:$4 sm:$0xff]  }
 0x14c   :  { %2340 = vmatpush2.bf16.msra.mxu1 %v6024_v44  ;;  %2368 = vmatprep.subr.bf16.mxu0 %v6035_v48  ;;  %v6104_v7 = vld [vmem:[#allocation10 + $0x4] ss:$12 sps:$4 sm:$0xff]   ;;  %v6110_v10 = vld [vmem:[#allocation10 + $0x16c] ss:$12 sps:$4 sm:$0xff]  }
 0x14d   :  { %2341 = vmatprep.subr.bf16.mxu1 %v6032_v47  ;;  %v6676_v0 = vpack.c.bf16 %v2417_v58, %v2405_v57  ;;  %v2418_v21 = vmax.f32 %v1973_v14, 0.0  ;;  %v6083_v47 = vld [vmem:[#allocation10 + $0x1e4] ss:$12 sps:$4 sm:$0xff]   ;;  %v6111_v14 = vld [vmem:[#allocation10 + $0x2e8] ss:$12 sps:$4 sm:$0xff]  }
 0x14f   :  { %2369 = vmatpush1.bf16.msra.mxu0 %v6033_v53  ;;  %v6684_v29 = vpack.c.bf16 %v2418_v21, %v2406_v28  ;;  %v6086_v53 = vld [vmem:[#allocation10 + $0x4c] ss:$12 sps:$4 sm:$0xff]  }
 0x150   :  { %2342 = vmatpush2.bf16.msra.mxu1 %v6030_v52  ;;  %2370 = vmatprep.subr.bf16.mxu0 %v6041_v56  ;;  %v6120_v21 = vld [vmem:[#allocation10 + $0x138] ss:$12 sps:$4 sm:$0xff]   ;;  %v6126_v28 = vld [vmem:[#allocation10 + $0x120] ss:$12 sps:$4 sm:$0xff]  }
 0x151   :  { %2343 = vmatprep.subr.bf16.mxu1 %v6038_v55  ;;  %v6089_v55 = vld [vmem:[#allocation10 + $0x1cc] ss:$12 sps:$4 sm:$0xff]  }
 0x153   :  { %2371 = vmatpush1.bf16.msra.mxu0 %v6039_v60  ;;  %v6087_v60 = vld [vmem:[#allocation10 + $0x1c8] ss:$12 sps:$4 sm:$0xff]  }
 0x154   :  { %2344 = vmatpush2.bf16.msra.mxu1 %v6036_v59  ;;  %2372 = vmatprep.subr.bf16.mxu0 %v6047_v62  ;;  %v6084_v59 = vld [vmem:[#allocation10 + $0x48] ss:$12 sps:$4 sm:$0xff]  }
 0x155   :  { %2345 = vmatprep.subr.bf16.mxu1 %v6044_v61  ;;  %v6092_v61 = vld [vmem:[#allocation10 + $0x34] ss:$12 sps:$4 sm:$0xff]  }
 0x156   :  { %v6095_v62 = vld [vmem:[#allocation10 + $0x1b4] ss:$12 sps:$4 sm:$0xff]  }
 0x157   :  { %2373 = vmatpush1.bf16.msra.mxu0 %v6045_v3  ;;  %v6098_v3 = vld [vmem:[#allocation10 + $0x1c] ss:$12 sps:$4 sm:$0xff]  }
 0x158   :  { %2346 = vmatpush2.bf16.msra.mxu1 %v6042_v1  ;;  %2374 = vmatprep.subr.bf16.mxu0 %v6053_v6  ;;  %v6090_v1 = vld [vmem:[#allocation10 + $0x30] ss:$12 sps:$4 sm:$0xff]   ;;  %v6099_v6 = vld [vmem:[#allocation10 + $0x198] ss:$12 sps:$4 sm:$0xff]  }
 0x159   :  { %2347 = vmatprep.subr.bf16.mxu1 %v6050_v5  ;;  %v6096_v5 = vld [vmem:[#allocation10 + $0x18] ss:$12 sps:$4 sm:$0xff]  }
 0x15b   :  { %2375 = vmatpush1.bf16.msra.mxu0 %v6051_v54  ;;  %v6102_v54 = vld [vmem:[#allocation10] ss:$12 sps:$4 sm:$0xff]  }
 0x15c   :  { %2348 = vmatpush2.bf16.msra.mxu1 %v6048_v8  ;;  %2376 = vmatprep.subr.bf16.mxu0 %v6059_v13  ;;  %v6107_v8 = vld [vmem:[#allocation10 + $0x184] ss:$12 sps:$4 sm:$0xff]   ;;  %v6108_v13 = vld [vmem:[#allocation10 + $0x168] ss:$12 sps:$4 sm:$0xff]  }
 0x15d   :  { %2349 = vmatprep.subr.bf16.mxu1 %v6056_v11  ;;  %v6113_v11 = vld [vmem:[#allocation10 + $0x2ec] ss:$12 sps:$4 sm:$0xff]  }
 0x15f   :  { %2377 = vmatpush1.bf16.msra.mxu0 %v6057_v16  ;;  %v6114_v16 = vld [vmem:[#allocation10 + $0x150] ss:$12 sps:$4 sm:$0xff]  }
 0x160   :  { %2350 = vmatpush2.bf16.msra.mxu1 %v6054_v15  ;;  %4378 = vmatprep.subr.bf16.mxu0 %v6062_v18  ;;  %v6116_v15 = vld [vmem:[#allocation10 + $0x154] ss:$12 sps:$4 sm:$0xff]   ;;  %v6117_v18 = vld [vmem:[#allocation10 + $0x2d0] ss:$12 sps:$4 sm:$0xff]  }
 0x161   :  { %4421 = vmatprep.subr.bf16.mxu1 %v6065_v19  ;;  %v6122_v19 = vld [vmem:[#allocation10 + $0x13c] ss:$12 sps:$4 sm:$0xff]  }
 0x162   :  { %v6691_v34 = vpop.f32.mrf.mxu0  ;;  %2395 = vmatmul.mubr.bf16.vlgmr.msra.gmra.mxu0 %v6640_v37 }
 0x163   :  { %v6689_v33 = vpop.f32.mrf.mxu1  ;;  %2352 = vmatmul.mubr.bf16.vlgmr.msra.gmra.mxu1 %v6647_v12  ;;  %4379 = vmatpush1.bf16.msra.mxu0 %v6060_v22  ;;  %v6075_v12 = vld [vmem:[#allocation10 + $0x1f8] ss:$12 sps:$4 sm:$0xff]   ;;  %v6125_v22 = vld [vmem:[#allocation10 + $0x2bc] ss:$12 sps:$4 sm:$0xff]  }
 0x164   :  { %4410 = vmatprep.mubr.bf16.mxu0 %v6684_v29  ;;  %4422 = vmatpush1.bf16.msra.mxu1 %v6063_v26  ;;  %v2054_v39 = vpop.f32.mrf.mxu0  ;;  %v6123_v26 = vld [vmem:[#allocation10 + $0x2b8] ss:$12 sps:$4 sm:$0xff]  }
 0x165   :  { %v2011_v38 = vpop.f32.mrf.mxu1  ;;  %4380 = vmatprep.subr.bf16.mxu0 %v6068_v27  ;;  %4423 = vmatprep.subr.bf16.mxu1 %v6071_v32  ;;  %v6128_v27 = vld [vmem:[#allocation10 + $0x124] ss:$12 sps:$4 sm:$0xff]   ;;  %v6134_v32 = vld [vmem:[#allocation10 + $0x10c] ss:$12 sps:$4 sm:$0xff]  }
 0x166   :  { %v2012_v40 = vadd.f32 %v2011_v38, %v404_v30  ;;  %v6698_v44 = vpop.f32.mrf.mxu0  ;;  %v6137_v38 = vld [vmem:[#allocation10 + $0x28c] ss:$12 sps:$4 sm:$0xff]  }
 0x167   :  { %v6696_v43 = vpop.f32.mrf.mxu1  ;;  %4381 = vmatpush1.bf16.msra.mxu0 %v6066_v31  ;;  %v6129_v31 = vld [vmem:[#allocation10 + $0x2a0] ss:$12 sps:$4 sm:$0xff]  }
 0x168   :  { %v2055_v37 = vadd.f32 %v2054_v39, %v2012_v40  ;;  %4424 = vmatpush1.bf16.msra.mxu1 %v6069_v35  ;;  %4382 = vmatprep.subr.bf16.mxu0 %v6074_v36  ;;  %v2058_v50 = vpop.f32.mrf.mxu0  ;;  %v6704_v35 = vsub.s32 2, %v6665_v20  ;;  %v6132_v36 = vld [vmem:[#allocation10 + $0x108] ss:$12 sps:$4 sm:$0xff]  }
 0x169   :  { %v2015_v45 = vpop.f32.mrf.mxu1  ;;  %4425 = vmatprep.subr.bf16.mxu1 %v6077_v42  ;;  %v6135_v39 = vld [vmem:[#allocation10 + $0x288] ss:$12 sps:$4 sm:$0xff]  }
 0x16a   :  { %v2016_v48 = vadd.f32 %v2015_v45, %v404_v30  ;;  %v2408_v56 = vmax.f32 %v2055_v37, 0.0  ;;  %v6131_v30 = vld [vmem:[#allocation10 + $0x2a4] ss:$12 sps:$4 sm:$0xff]   ;;  %v6140_v40 = vld [vmem:[#allocation10 + $0xf4] ss:$12 sps:$4 sm:$0xff]   ;;  %v400_v42 = vrot.slane %v6667_v24, %v6704_v35 }
 0x16b   :  { %4383 = vmatpush1.bf16.msra.mxu0 %v6072_v41  ;;  %v6143_v41 = vld [vmem:[#allocation10 + $0x274] ss:$12 sps:$4 sm:$0xff]   ;;  %v6141_v37 = vld [vmem:[#allocation10 + $0x270] ss:$12 sps:$4 sm:$0xff]  }
 0x16c   :  { %v2059_v52 = vadd.f32 %v2058_v50, %v2016_v48  ;;  %4426 = vmatpush1.bf16.msra.mxu1 %v6075_v12  ;;  %4384 = vmatprep.subr.bf16.mxu0 %v6080_v46  ;;  %v6138_v12 = vld [vmem:[#allocation10 + $0xf0] ss:$12 sps:$4 sm:$0xff]   ;;  %v2014_v46 = vadd.f32 %v6696_v43, %v400_v42  ;;  %v2010_v48 = vadd.f32 %v6689_v33, %v400_v42  ;;  %v6147_v50 = vld [vmem:[#allocation10 + $0x258] ss:$12 sps:$4 sm:$0xff]   ;;  %v6153_v43 = vld [vmem:[#allocation10 + $0x240] ss:$12 sps:$4 sm:$0xff]  }
 0x16d   :  { %4427 = vmatprep.subr.bf16.mxu1 %v6083_v47  ;;  %v6146_v45 = vld [vmem:[#allocation10 + $0xdc] ss:$12 sps:$4 sm:$0xff]   ;;  %v411_v33 = vsub.s32 5, %v6665_v20  ;;  %v6191_v42 = vld [vmem:[#allocation10 + $0x4b4] ss:$12 sps:$4 sm:$0xff]  }
 0x16e   :  { %v2420_v57 = vmax.f32 %v2059_v52, 0.0  ;;  %v6149_v47 = vld [vmem:[#allocation10 + $0x25c] ss:$12 sps:$4 sm:$0xff]   ;;  %v2057_v52 = vadd.f32 %v6698_v44, %v2014_v46 }
 0x16f   :  { %4385 = vmatpush1.bf16.msra.mxu0 %v6078_v49  ;;  %v6144_v49 = vld [vmem:[#allocation10 + $0xd8] ss:$12 sps:$4 sm:$0xff]   ;;  %v6159_v44 = vld [vmem:[#allocation10 + $0x528] ss:$12 sps:$4 sm:$0xff]  }
 0x170   :  { %v6700_v58 = vpack.c.bf16 %v2420_v57, %v2408_v56  ;;  %4428 = vmatpush1.bf16.msra.mxu1 %v6081_v51  ;;  %4386 = vmatprep.subr.bf16.mxu0 %v6086_v53  ;;  %v6152_v51 = vld [vmem:[#allocation10 + $0xc4] ss:$12 sps:$4 sm:$0xff]   ;;  %v2053_v56 = vadd.f32 %v6691_v34, %v2010_v48  ;;  %v6158_v57 = vld [vmem:[#allocation10 + $0x3ac] ss:$12 sps:$4 sm:$0xff]   ;;  %v6197_v46 = vld [vmem:[#allocation10 + $0x49c] ss:$12 sps:$4 sm:$0xff]  }
 0x171   :  { %4429 = vmatprep.subr.bf16.mxu1 %v6089_v55  ;;  %v6155_v53 = vld [vmem:[#allocation10 + $0x244] ss:$12 sps:$4 sm:$0xff]   ;;  %v6150_v55 = vld [vmem:[#allocation10 + $0xc0] ss:$12 sps:$4 sm:$0xff]  }
 0x172   :  { %4453 = vmatprep.mubr.bf16.mxu1 %v6700_v58  ;;  %v6195_v48 = vld [vmem:[#allocation10 + $0x498] ss:$12 sps:$4 sm:$0xff]  }
 0x173   :  { %4387 = vmatpush1.bf16.msra.mxu0 %v6084_v59  ;;  %v6161_v59 = vld [vmem:[#allocation10 + $0x52c] ss:$12 sps:$4 sm:$0xff]  }
 0x174   :  { %4430 = vmatpush1.bf16.msra.mxu1 %v6087_v60  ;;  %4388 = vmatprep.subr.bf16.mxu0 %v6092_v61  ;;  %v2419_v60 = vmax.f32 %v2057_v52, 0.0  ;;  %v6156_v61 = vld [vmem:[#allocation10 + $0x3a8] ss:$12 sps:$4 sm:$0xff]   ;;  %v6201_v52 = vld [vmem:[#allocation10 + $0x480] ss:$12 sps:$4 sm:$0xff]  }
 0x175   :  { %4431 = vmatprep.subr.bf16.mxu1 %v6095_v62 }
 0x177   :  { %4389 = vmatpush1.bf16.msra.mxu0 %v6090_v1  ;;  %v2407_v1 = vmax.f32 %v2053_v56, 0.0  ;;  %v419_v56 = vsub.s32 7, %v6665_v20 }
 0x178   :  { %4432 = vmatpush1.bf16.msra.mxu1 %v6093_v2  ;;  %4390 = vmatprep.subr.bf16.mxu0 %v6098_v3  ;;  %v6164_v2 = vld [vmem:[#allocation10 + $0x394] ss:$12 sps:$4 sm:$0xff]   ;;  %v412_v3 = vrot.slane %v6667_v24, %v411_v33 }
 0x179   :  { %4433 = vmatprep.subr.bf16.mxu1 %v6101_v4  ;;  %v6715_v34 = vpack.c.bf16 %v2419_v60, %v2407_v1  ;;  %v6162_v4 = vld [vmem:[#allocation10 + $0x390] ss:$12 sps:$4 sm:$0xff]   ;;  %v6444_v60 = vld [vmem:[#allocation9] sm:$0xff] }
 0x17a   :  { %v420_v33 = vrot.slane %v6444_v60, %v419_v56  ;;  %v6240_v56 = vld [vmem:[#allocation10 + $0x3d8] ss:$12 sps:$4 sm:$0xff]  }
 0x17b   :  { %4391 = vmatpush1.bf16.msra.mxu0 %v6096_v5  ;;  %v6167_v5 = vld [vmem:[#allocation10 + $0x514] ss:$12 sps:$4 sm:$0xff]  }
 0x17c   :  { %4434 = vmatpush1.bf16.msra.mxu1 %v6099_v6  ;;  %4392 = vmatprep.subr.bf16.mxu0 %v6104_v7 }
 0x17d   :  { %4435 = vmatprep.subr.bf16.mxu1 %v6107_v8  ;;  %v6165_v8 = vld [vmem:[#allocation10 + $0x510] ss:$12 sps:$4 sm:$0xff]  }
 0x17f   :  { %4393 = vmatpush1.bf16.msra.mxu0 %v6102_v54 }
 0x180   :  { %4436 = vmatpush1.bf16.msra.mxu1 %v6105_v9  ;;  %4394 = vmatprep.subr.bf16.mxu0 %v6110_v10  ;;  %v6170_v9 = vld [vmem:[#allocation10 + $0x37c] ss:$12 sps:$4 sm:$0xff]  }
 0x181   :  { %4437 = vmatprep.subr.bf16.mxu1 %v6113_v11  ;;  %v6173_v11 = vld [vmem:[#allocation10 + $0x4fc] ss:$12 sps:$4 sm:$0xff]  }
 0x183   :  { %4395 = vmatpush2.bf16.msra.mxu0 %v6108_v13  ;;  %v6713_v62 = vpop.f32.mrf.mxu1 }
 0x184   :  { %4438 = vmatpush2.bf16.msra.mxu1 %v6111_v14  ;;  %4396 = vmatprep.subr.bf16.mxu0 %v6116_v15  ;;  %v6168_v14 = vld [vmem:[#allocation10 + $0x378] ss:$12 sps:$4 sm:$0xff]  }
 0x185   :  { %4439 = vmatprep.subr.bf16.mxu1 %v6119_v17  ;;  %v2140_v6 = vpop.f32.mrf.mxu1  ;;  %v6171_v15 = vld [vmem:[#allocation10 + $0x4f8] ss:$12 sps:$4 sm:$0xff]  }
 0x186   :  { %v6176_v17 = vld [vmem:[#allocation10 + $0x364] ss:$12 sps:$4 sm:$0xff]  }
 0x187   :  { %4397 = vmatpush2.bf16.msra.mxu0 %v6114_v16  ;;  %v6722_v13 = vpop.f32.mrf.mxu1 }
 0x188   :  { %4440 = vmatpush2.bf16.msra.mxu1 %v6117_v18  ;;  %4398 = vmatprep.subr.bf16.mxu0 %v6122_v19 }
 0x189   :  { %4441 = vmatprep.subr.bf16.mxu1 %v6125_v22  ;;  %v2144_v22 = vpop.f32.mrf.mxu1 }
 0x18b   :  { %4399 = vmatpush2.bf16.msra.mxu0 %v6120_v21  ;;  %v6179_v21 = vld [vmem:[#allocation10 + $0x4e4] ss:$12 sps:$4 sm:$0xff]  }
 0x18c   :  { %4442 = vmatpush2.bf16.msra.mxu1 %v6123_v26  ;;  %4400 = vmatprep.subr.bf16.mxu0 %v6128_v27  ;;  %v6174_v26 = vld [vmem:[#allocation10 + $0x360] ss:$12 sps:$4 sm:$0xff]  }
 0x18d   :  { %4443 = vmatprep.subr.bf16.mxu1 %v6131_v30  ;;  %v6182_v30 = vld [vmem:[#allocation10 + $0x34c] ss:$12 sps:$4 sm:$0xff]  }
 0x18f   :  { %4401 = vmatpush2.bf16.msra.mxu0 %v6126_v28  ;;  %v6177_v28 = vld [vmem:[#allocation10 + $0x4e0] ss:$12 sps:$4 sm:$0xff]  }
 0x190   :  { %4444 = vmatpush2.bf16.msra.mxu1 %v6129_v31  ;;  %4402 = vmatprep.subr.bf16.mxu0 %v6134_v32 }
 0x191   :  { %4445 = vmatprep.subr.bf16.mxu1 %v6137_v38  ;;  %v6185_v38 = vld [vmem:[#allocation10 + $0x4cc] ss:$12 sps:$4 sm:$0xff]  }
 0x193   :  { %4403 = vmatpush2.bf16.msra.mxu0 %v6132_v36  ;;  %v6180_v36 = vld [vmem:[#allocation10 + $0x348] ss:$12 sps:$4 sm:$0xff]  }
 0x194   :  { %4446 = vmatpush2.bf16.msra.mxu1 %v6135_v39  ;;  %4404 = vmatprep.subr.bf16.mxu0 %v6140_v40  ;;  %v6183_v39 = vld [vmem:[#allocation10 + $0x4c8] ss:$12 sps:$4 sm:$0xff]  }
 0x195   :  { %4447 = vmatprep.subr.bf16.mxu1 %v6143_v41  ;;  %v6188_v41 = vld [vmem:[#allocation10 + $0x334] ss:$12 sps:$4 sm:$0xff]  }
 0x197   :  { %4405 = vmatpush2.bf16.msra.mxu0 %v6138_v12  ;;  %v6186_v12 = vld [vmem:[#allocation10 + $0x330] ss:$12 sps:$4 sm:$0xff]  }
 0x198   :  { %4448 = vmatpush2.bf16.msra.mxu1 %v6141_v37  ;;  %4406 = vmatprep.subr.bf16.mxu0 %v6146_v45  ;;  %v6189_v37 = vld [vmem:[#allocation10 + $0x4b0] ss:$12 sps:$4 sm:$0xff]  }
 0x199   :  { %4449 = vmatprep.subr.bf16.mxu1 %v6149_v47  ;;  %v6194_v45 = vld [vmem:[#allocation10 + $0x31c] ss:$12 sps:$4 sm:$0xff]   ;;  %v6192_v47 = vld [vmem:[#allocation10 + $0x318] ss:$12 sps:$4 sm:$0xff]  }
 0x19b   :  { %4407 = vmatpush2.bf16.msra.mxu0 %v6144_v49  ;;  %v6200_v49 = vld [vmem:[#allocation10 + $0x304] ss:$12 sps:$4 sm:$0xff]  }
 0x19c   :  { %4450 = vmatpush2.bf16.msra.mxu1 %v6147_v50  ;;  %4408 = vmatprep.subr.bf16.mxu0 %v6152_v51  ;;  %v6203_v50 = vld [vmem:[#allocation10 + $0x484] ss:$12 sps:$4 sm:$0xff]   ;;  %v6198_v51 = vld [vmem:[#allocation10 + $0x300] ss:$12 sps:$4 sm:$0xff]  }
 0x19d   :  { %4451 = vmatprep.subr.bf16.mxu1 %v6155_v53  ;;  %v6206_v53 = vld [vmem:[#allocation10 + $0x46c] ss:$12 sps:$4 sm:$0xff]  }
 0x19f   :  { %4409 = vmatpush2.bf16.msra.mxu0 %v6150_v55  ;;  %v6209_v55 = vld [vmem:[#allocation10 + $0x5ec] ss:$12 sps:$4 sm:$0xff]  }
 0x1a0   :  { %4452 = vmatpush2.bf16.msra.mxu1 %v6153_v43  ;;  %4464 = vmatprep.subr.bf16.mxu0 %v6158_v57  ;;  %v6204_v43 = vld [vmem:[#allocation10 + $0x468] ss:$12 sps:$4 sm:$0xff]  }
 0x1a1   :  { %4507 = vmatprep.subr.bf16.mxu1 %v6161_v59  ;;  %v6207_v57 = vld [vmem:[#allocation10 + $0x5e8] ss:$12 sps:$4 sm:$0xff]  }
 0x1a2   :  { %v6718_v7 = vpop.f32.mrf.mxu0  ;;  %4411 = vmatmul.mubr.bf16.vlgmr.msra.gmra.mxu0 %v6676_v0  ;;  %v6212_v59 = vld [vmem:[#allocation10 + $0x454] ss:$12 sps:$4 sm:$0xff]  }
 0x1a3   :  { %4454 = vmatmul.mubr.bf16.vlgmr.msra.gmra.mxu1 %v6715_v34  ;;  %4465 = vmatpush1.bf16.msra.mxu0 %v6156_v61  ;;  %v6215_v61 = vld [vmem:[#allocation10 + $0x5d4] ss:$12 sps:$4 sm:$0xff]  }
 0x1a4   :  { %4508 = vmatpush1.bf16.msra.mxu1 %v6159_v44  ;;  %v2097_v54 = vpop.f32.mrf.mxu0  ;;  %4466 = vmatprep.subr.bf16.mxu0 %v6164_v2  ;;  %v6210_v2 = vld [vmem:[#allocation10 + $0x450] ss:$12 sps:$4 sm:$0xff]  }
 0x1a5   :  { %v2098_v10 = vadd.f32 %v2097_v54, %v412_v3  ;;  %4509 = vmatprep.subr.bf16.mxu1 %v6167_v5  ;;  %v6213_v5 = vld [vmem:[#allocation10 + $0x5d0] ss:$12 sps:$4 sm:$0xff]  }
 0x1a6   :  { %v6724_v24 = vpop.f32.mrf.mxu0  ;;  %v6221_v54 = vld [vmem:[#allocation10 + $0x5bc] ss:$12 sps:$4 sm:$0xff]  }
 0x1a7   :  { %4467 = vmatpush1.bf16.msra.mxu0 %v6162_v4  ;;  %v2141_v18 = vadd.f32 %v2140_v6, %v2098_v10  ;;  %v6218_v6 = vld [vmem:[#allocation10 + $0x43c] ss:$12 sps:$4 sm:$0xff]  }
 0x1a8   :  { %4510 = vmatpush1.bf16.msra.mxu1 %v6165_v8  ;;  %v2101_v16 = vpop.f32.mrf.mxu0  ;;  %4468 = vmatprep.subr.bf16.mxu0 %v6170_v9 }
 0x1a9   :  { %v2102_v19 = vadd.f32 %v2101_v16, %v412_v3  ;;  %4511 = vmatprep.subr.bf16.mxu1 %v6173_v11  ;;  %v2410_v31 = vmax.f32 %v2141_v18, 0.0  ;;  %v6216_v11 = vld [vmem:[#allocation10 + $0x438] ss:$12 sps:$4 sm:$0xff]  }
 0x1aa   :  { %v6224_v16 = vld [vmem:[#allocation10 + $0x424] ss:$12 sps:$4 sm:$0xff]  }
 0x1ab   :  { %v2145_v27 = vadd.f32 %v2144_v22, %v2102_v19  ;;  %4469 = vmatpush1.bf16.msra.mxu0 %v6168_v14  ;;  %v6219_v14 = vld [vmem:[#allocation10 + $0x5b8] ss:$12 sps:$4 sm:$0xff]   ;;  %v415_v22 = vsub.s32 6, %v6665_v20 }
 0x1ac   :  { %4512 = vmatpush1.bf16.msra.mxu1 %v6171_v15  ;;  %4470 = vmatprep.subr.bf16.mxu0 %v6176_v17  ;;  %v6227_v19 = vld [vmem:[#allocation10 + $0x5a4] ss:$12 sps:$4 sm:$0xff]  }
 0x1ad   :  { %v2422_v32 = vmax.f32 %v2145_v27, 0.0  ;;  %4513 = vmatprep.subr.bf16.mxu1 %v6179_v21  ;;  %v407_v21 = vsub.s32 4, %v6665_v20 }
 0x1af   :  { %4471 = vmatpush1.bf16.msra.mxu0 %v6174_v26  ;;  %v6726_v40 = vpack.c.bf16 %v2422_v32, %v2410_v31  ;;  %v6230_v31 = vld [vmem:[#allocation10 + $0x40c] ss:$12 sps:$4 sm:$0xff]  }
 0x1b0   :  { %4514 = vmatpush1.bf16.msra.mxu1 %v6177_v28  ;;  %4472 = vmatprep.subr.bf16.mxu0 %v6182_v30  ;;  %v6222_v28 = vld [vmem:[#allocation10 + $0x420] ss:$12 sps:$4 sm:$0xff]  }
 0x1b1   :  { %4496 = vmatprep.mubr.bf16.mxu0 %v6726_v40  ;;  %4515 = vmatprep.subr.bf16.mxu1 %v6185_v38  ;;  %v6225_v30 = vld [vmem:[#allocation10 + $0x5a0] ss:$12 sps:$4 sm:$0xff]   ;;  %v6228_v38 = vld [vmem:[#allocation10 + $0x408] ss:$12 sps:$4 sm:$0xff]  }
 0x1b3   :  { %4473 = vmatpush1.bf16.msra.mxu0 %v6180_v36 }
 0x1b4   :  { %4516 = vmatpush1.bf16.msra.mxu1 %v6183_v39  ;;  %4474 = vmatprep.subr.bf16.mxu0 %v6188_v41  ;;  %v6233_v39 = vld [vmem:[#allocation10 + $0x58c] ss:$12 sps:$4 sm:$0xff]   ;;  %v6231_v41 = vld [vmem:[#allocation10 + $0x588] ss:$12 sps:$4 sm:$0xff]  }
 0x1b5   :  { %4517 = vmatprep.subr.bf16.mxu1 %v6191_v42 }
 0x1b7   :  { %4475 = vmatpush1.bf16.msra.mxu0 %v6186_v12  ;;  %v6236_v12 = vld [vmem:[#allocation10 + $0x3f4] ss:$12 sps:$4 sm:$0xff]  }
 0x1b8   :  { %4518 = vmatpush1.bf16.msra.mxu1 %v6189_v37  ;;  %4476 = vmatprep.subr.bf16.mxu0 %v6194_v45  ;;  %v6239_v37 = vld [vmem:[#allocation10 + $0x574] ss:$12 sps:$4 sm:$0xff]   ;;  %v408_v45 = vrot.slane %v6444_v60, %v407_v21  ;;  %v6284_v21 = vld [vmem:[#allocation10 + $0x7e4] ss:$12 sps:$4 sm:$0xff]  }
 0x1b9   :  { %4519 = vmatprep.subr.bf16.mxu1 %v6197_v46  ;;  %v416_v46 = vrot.slane %v6444_v60, %v415_v22  ;;  %v6251_v60 = vld [vmem:[#allocation10 + $0x544] ss:$12 sps:$4 sm:$0xff]   ;;  %v6261_v22 = vld [vmem:[#allocation10 + $0x660] ss:$12 sps:$4 sm:$0xff]  }
 0x1bb   :  { %4477 = vmatpush1.bf16.msra.mxu0 %v6192_v47  ;;  %v6234_v47 = vld [vmem:[#allocation10 + $0x3f0] ss:$12 sps:$4 sm:$0xff]  }
 0x1bc   :  { %4520 = vmatpush1.bf16.msra.mxu1 %v6195_v48  ;;  %4478 = vmatprep.subr.bf16.mxu0 %v6200_v49  ;;  %v2100_v48 = vadd.f32 %v6724_v24, %v408_v45  ;;  %v6237_v49 = vld [vmem:[#allocation10 + $0x570] ss:$12 sps:$4 sm:$0xff]  }
 0x1bd   :  { %4521 = vmatprep.subr.bf16.mxu1 %v6203_v50  ;;  %v6242_v50 = vld [vmem:[#allocation10 + $0x3dc] ss:$12 sps:$4 sm:$0xff]  }
 0x1bf   :  { %4479 = vmatpush1.bf16.msra.mxu0 %v6198_v51 }
 0x1c0   :  { %4522 = vmatpush1.bf16.msra.mxu1 %v6201_v52  ;;  %4480 = vmatprep.subr.bf16.mxu0 %v6206_v53  ;;  %v6245_v52 = vld [vmem:[#allocation10 + $0x55c] ss:$12 sps:$4 sm:$0xff]   ;;  %v2096_v53 = vadd.f32 %v6718_v7, %v408_v45  ;;  %v6287_v45 = vld [vmem:[#allocation10 + $0x604] ss:$12 sps:$4 sm:$0xff]  }
 0x1c1   :  { %4523 = vmatprep.subr.bf16.mxu1 %v6209_v55 }
 0x1c2   :  { %v6732_v1 = vpop.f32.mrf.mxu0 }
 0x1c3   :  { %v6730_v44 = vpop.f32.mrf.mxu1  ;;  %4481 = vmatpush2.bf16.msra.mxu0 %v6204_v43  ;;  %v2143_v43 = vadd.f32 %v6722_v13, %v2100_v48  ;;  %v6266_v13 = vld [vmem:[#allocation10 + $0x82c] ss:$12 sps:$4 sm:$0xff]  }
 0x1c4   :  { %4524 = vmatpush2.bf16.msra.mxu1 %v6207_v57  ;;  %v2226_v4 = vpop.f32.mrf.mxu0  ;;  %4482 = vmatprep.subr.bf16.mxu0 %v6212_v59  ;;  %v2182_v55 = vadd.f32 %v6730_v44, %v416_v46  ;;  %v6243_v57 = vld [vmem:[#allocation10 + $0x558] ss:$12 sps:$4 sm:$0xff]   ;;  %v6249_v44 = vld [vmem:[#allocation10 + $0x540] ss:$12 sps:$4 sm:$0xff]  }
 0x1c5   :  { %v2183_v3 = vpop.f32.mrf.mxu1  ;;  %4525 = vmatprep.subr.bf16.mxu1 %v6215_v61  ;;  %v6248_v59 = vld [vmem:[#allocation10 + $0x3c4] ss:$12 sps:$4 sm:$0xff]   ;;  %v2421_v7 = vmax.f32 %v2143_v43, 0.0  ;;  %v6285_v48 = vld [vmem:[#allocation10 + $0x600] ss:$12 sps:$4 sm:$0xff]  }
 0x1c6   :  { %v2184_v8 = vadd.f32 %v2183_v3, %v420_v33  ;;  %v2228_v10 = vpop.f32.mrf.mxu0  ;;  %v2225_v61 = vadd.f32 %v6732_v1, %v2182_v55  ;;  %v6254_v3 = vld [vmem:[#allocation10 + $0x6ac] ss:$12 sps:$4 sm:$0xff]   ;;  %v6264_v1 = vld [vmem:[#allocation10 + $0x828] ss:$12 sps:$4 sm:$0xff]   ;;  %v6753_v55 = vld [vmem:[#allocation9 + $0x8] sm:$0xf] }
 0x1c7   :  { %v2185_v9 = vpop.f32.mrf.mxu1  ;;  %4483 = vmatpush2.bf16.msra.mxu0 %v6210_v2  ;;  %v6246_v2 = vld [vmem:[#allocation10 + $0x3c0] ss:$12 sps:$4 sm:$0xff]   ;;  %v6312_v43 = vld [vmem:[#allocation10 + $0x8e8] ss:$12 sps:$4 sm:$0xff]  }
 0x1c8   :  { %4526 = vmatpush2.bf16.msra.mxu1 %v6213_v5  ;;  %4484 = vmatprep.subr.bf16.mxu0 %v6218_v6  ;;  %v2227_v17 = vadd.f32 %v2226_v4, %v2184_v8  ;;  %v2230_v26 = vpop.f32.mrf.mxu0  ;;  %v2186_v51 = vadd.f32 %v2185_v9, %v416_v46  ;;  %v2411_v6 = vmax.f32 %v2225_v61, 0.0  ;;  %v6252_v8 = vld [vmem:[#allocation10 + $0x6a8] ss:$12 sps:$4 sm:$0xff]   ;;  %v6300_v46 = vld [vmem:[#allocation10 + $0x798] ss:$12 sps:$4 sm:$0xff]  }
 0x1c9   :  { %v2187_v15 = vpop.f32.mrf.mxu1  ;;  %4527 = vmatprep.subr.bf16.mxu1 %v6221_v54 }
 0x1ca   :  { %v2188_v18 = vadd.f32 %v2187_v15, %v420_v33  ;;  %v2412_v32 = vmax.f32 %v2227_v17, 0.0  ;;  %v2229_v24 = vadd.f32 %v2228_v10, %v2186_v51  ;;  %v2139_v33 = vadd.f32 %v6713_v62, %v2096_v53  ;;  %v6257_v62 = vld [vmem:[#allocation10 + $0x694] ss:$12 sps:$4 sm:$0xff]   ;;  %v6270_v15 = vld [vmem:[#allocation10 + $0x810] ss:$12 sps:$4 sm:$0xff]  }
 0x1cb   :  { %4485 = vmatpush2.bf16.msra.mxu0 %v6216_v11  ;;  %v6272_v10 = vld [vmem:[#allocation10 + $0x814] ss:$12 sps:$4 sm:$0xff]   ;;  %v6255_v11 = vld [vmem:[#allocation10 + $0x690] ss:$12 sps:$4 sm:$0xff]   ;;  %v6258_v17 = vld [vmem:[#allocation10 + $0x678] ss:$12 sps:$4 sm:$0xff]  }
 0x1cc   :  { %v2231_v27 = vadd.f32 %v2230_v26, %v2188_v18  ;;  %4528 = vmatpush2.bf16.msra.mxu1 %v6219_v14  ;;  %4486 = vmatprep.subr.bf16.mxu0 %v6224_v16  ;;  %v2423_v4 = vmax.f32 %v2229_v24, 0.0  ;;  %v2409_v5 = vmax.f32 %v2139_v33, 0.0  ;;  %v6260_v14 = vld [vmem:[#allocation10 + $0x67c] ss:$12 sps:$4 sm:$0xff]   ;;  %v6263_v18 = vld [vmem:[#allocation10 + $0x664] ss:$12 sps:$4 sm:$0xff]  }
 0x1cd   :  { %4529 = vmatprep.subr.bf16.mxu1 %v6227_v19  ;;  %v6278_v16 = vld [vmem:[#allocation10 + $0x7fc] ss:$12 sps:$4 sm:$0xff]   ;;  %v6276_v19 = vld [vmem:[#allocation10 + $0x7f8] ss:$12 sps:$4 sm:$0xff]  }
 0x1ce   :  { %v2424_v36 = vmax.f32 %v2231_v27, 0.0  ;;  %v6745_v54 = vpack.c.bf16 %v2421_v7, %v2409_v5  ;;  %v6747_v9 = vpack.c.bf16 %v2423_v4, %v2411_v6  ;;  %v6269_v26 = vld [vmem:[#allocation10 + $0x64c] ss:$12 sps:$4 sm:$0xff]   ;;  %v6291_v53 = vld [vmem:[#allocation10 + $0x768] ss:$12 sps:$4 sm:$0xff]  }
 0x1cf   :  { %4487 = vmatpush2.bf16.msra.mxu0 %v6222_v28  ;;  %v6282_v27 = vld [vmem:[#allocation10 + $0x7e0] ss:$12 sps:$4 sm:$0xff]   ;;  %v6297_v33 = vld [vmem:[#allocation10 + $0x750] ss:$12 sps:$4 sm:$0xff]   ;;  %v6303_v5 = vld [vmem:[#allocation10 + $0x738] ss:$12 sps:$4 sm:$0xff]  }
 0x1d0   :  { %v6736_v42 = vpack.c.bf16 %v2424_v36, %v2412_v32  ;;  %4530 = vmatpush2.bf16.msra.mxu1 %v6225_v30  ;;  %4488 = vmatprep.subr.bf16.mxu0 %v6230_v31  ;;  %v6290_v28 = vld [vmem:[#allocation10 + $0x7cc] ss:$12 sps:$4 sm:$0xff]   ;;  %v6267_v30 = vld [vmem:[#allocation10 + $0x648] ss:$12 sps:$4 sm:$0xff]   ;;  %v6318_v7 = vld [vmem:[#allocation10 + $0x8d0] ss:$12 sps:$4 sm:$0xff]  }
 0x1d1   :  { %4531 = vmatprep.subr.bf16.mxu1 %v6233_v39  ;;  %v6275_v31 = vld [vmem:[#allocation10 + $0x634] ss:$12 sps:$4 sm:$0xff]   ;;  %v6281_v39 = vld [vmem:[#allocation10 + $0x61c] ss:$12 sps:$4 sm:$0xff]   ;;  %v6314_v51 = vld [vmem:[#allocation10 + $0x8ec] ss:$12 sps:$4 sm:$0xff]  }
 0x1d2   :  { %4539 = vmatprep.mubr.bf16.mxu1 %v6736_v42  ;;  %v6288_v32 = vld [vmem:[#allocation10 + $0x7c8] ss:$12 sps:$4 sm:$0xff]  }
 0x1d3   :  { %4489 = vmatpush2.bf16.msra.mxu0 %v6228_v38  ;;  %v6296_v36 = vld [vmem:[#allocation10 + $0x7b4] ss:$12 sps:$4 sm:$0xff]   ;;  %v6273_v38 = vld [vmem:[#allocation10 + $0x630] ss:$12 sps:$4 sm:$0xff]  }
 0x1d4   :  { %4532 = vmatpush2.bf16.msra.mxu1 %v6231_v41  ;;  %4490 = vmatprep.subr.bf16.mxu0 %v6236_v12  ;;  %v6294_v41 = vld [vmem:[#allocation10 + $0x7b0] ss:$12 sps:$4 sm:$0xff]  }
 0x1d5   :  { %4533 = vmatprep.subr.bf16.mxu1 %v6239_v37  ;;  %v6302_v12 = vld [vmem:[#allocation10 + $0x79c] ss:$12 sps:$4 sm:$0xff]   ;;  %v6279_v37 = vld [vmem:[#allocation10 + $0x618] ss:$12 sps:$4 sm:$0xff]  }
 0x1d7   :  { %4491 = vmatpush2.bf16.msra.mxu0 %v6234_v47  ;;  %v6308_v47 = vld [vmem:[#allocation10 + $0x784] ss:$12 sps:$4 sm:$0xff]  }
 0x1d8   :  { %4534 = vmatpush2.bf16.msra.mxu1 %v6237_v49  ;;  %4492 = vmatprep.subr.bf16.mxu0 %v6242_v50  ;;  %v6293_v49 = vld [vmem:[#allocation10 + $0x76c] ss:$12 sps:$4 sm:$0xff]  }
 0x1d9   :  { %4535 = vmatprep.subr.bf16.mxu1 %v6245_v52  ;;  %v6306_v50 = vld [vmem:[#allocation10 + $0x780] ss:$12 sps:$4 sm:$0xff]  }
 0x1db   :  { %4493 = vmatpush2.bf16.msra.mxu0 %v6240_v56  ;;  %v6299_v56 = vld [vmem:[#allocation10 + $0x754] ss:$12 sps:$4 sm:$0xff]  }
 0x1dc   :  { %4536 = vmatpush2.bf16.msra.mxu1 %v6243_v57  ;;  %4494 = vmatprep.subr.bf16.mxu0 %v6248_v59  ;;  %v428_v57 = vrot.slane %v6753_v55, %v6679_v63  ;;  %v6320_v59 = vld [vmem:[#allocation10 + $0x8d4] ss:$12 sps:$4 sm:$0xff]  }
 0x1dd   :  { %4537 = vmatprep.subr.bf16.mxu1 %v6251_v60 }
 0x1df   :  { %4495 = vmatpush2.bf16.msra.mxu0 %v6246_v2  ;;  %v6305_v2 = vld [vmem:[#allocation10 + $0x73c] ss:$12 sps:$4 sm:$0xff]  }
 0x1e0   :  { %4538 = vmatpush2.bf16.msra.mxu1 %v6249_v44  ;;  %4550 = vmatprep.subr.bf16.mxu0 %v6254_v3  ;;  %v6326_v3 = vld [vmem:[#allocation10 + $0x8bc] ss:$12 sps:$4 sm:$0xff]  }
 0x1e1   :  { %4593 = vmatprep.subr.bf16.mxu1 %v6266_v13 }
 0x1e2   :  { %4497 = vmatmul.mubr.bf16.vlgmr.msra.gmra.mxu0 %v6745_v54 }
 0x1e3   :  { %4540 = vmatmul.mubr.bf16.vlgmr.msra.gmra.mxu1 %v6747_v9  ;;  %4551 = vmatpush1.bf16.msra.mxu0 %v6252_v8  ;;  %v6751_v52 = vpop.f32.mrf.mxu1  ;;  %v6311_v8 = vld [vmem:[#allocation10 + $0x724] ss:$12 sps:$4 sm:$0xff]  }
 0x1e4   :  { %4552 = vmatprep.subr.bf16.mxu0 %v6257_v62  ;;  %4594 = vmatpush1.bf16.msra.mxu1 %v6264_v1  ;;  %v6324_v62 = vld [vmem:[#allocation10 + $0x8b8] ss:$12 sps:$4 sm:$0xff]  }
 0x1e5   :  { %4595 = vmatprep.subr.bf16.mxu1 %v6272_v10  ;;  %v2312_v24 = vpop.f32.mrf.mxu1 }
 0x1e7   :  { %4553 = vmatpush1.bf16.msra.mxu0 %v6255_v11  ;;  %v2314_v4 = vpop.f32.mrf.mxu1  ;;  %v6332_v11 = vld [vmem:[#allocation10 + $0x8a4] ss:$12 sps:$4 sm:$0xff]  }
 0x1e8   :  { %4554 = vmatprep.subr.bf16.mxu0 %v6260_v14  ;;  %4596 = vmatpush1.bf16.msra.mxu1 %v6270_v15 }
 0x1e9   :  { %4597 = vmatprep.subr.bf16.mxu1 %v6278_v16  ;;  %v2316_v14 = vpop.f32.mrf.mxu1  ;;  %v6309_v16 = vld [vmem:[#allocation10 + $0x720] ss:$12 sps:$4 sm:$0xff]  }
 0x1eb   :  { %4555 = vmatpush1.bf16.msra.mxu0 %v6258_v17  ;;  %v6317_v17 = vld [vmem:[#allocation10 + $0x70c] ss:$12 sps:$4 sm:$0xff]  }
 0x1ec   :  { %4556 = vmatprep.subr.bf16.mxu0 %v6263_v18  ;;  %4598 = vmatpush1.bf16.msra.mxu1 %v6276_v19  ;;  %v6330_v18 = vld [vmem:[#allocation10 + $0x8a0] ss:$12 sps:$4 sm:$0xff]  }
 0x1ed   :  { %4599 = vmatprep.subr.bf16.mxu1 %v6284_v21 }
 0x1ef   :  { %4557 = vmatpush1.bf16.msra.mxu0 %v6261_v22  ;;  %v6338_v22 = vld [vmem:[#allocation10 + $0x88c] ss:$12 sps:$4 sm:$0xff]  }
 0x1f0   :  { %4558 = vmatprep.subr.bf16.mxu0 %v6269_v26  ;;  %4600 = vmatpush1.bf16.msra.mxu1 %v6282_v27  ;;  %v6315_v27 = vld [vmem:[#allocation10 + $0x708] ss:$12 sps:$4 sm:$0xff]  }
 0x1f1   :  { %4601 = vmatprep.subr.bf16.mxu1 %v6290_v28  ;;  %v6323_v28 = vld [vmem:[#allocation10 + $0x6f4] ss:$12 sps:$4 sm:$0xff]  }
 0x1f3   :  { %4559 = vmatpush1.bf16.msra.mxu0 %v6267_v30  ;;  %v6336_v30 = vld [vmem:[#allocation10 + $0x888] ss:$12 sps:$4 sm:$0xff]  }
 0x1f4   :  { %4560 = vmatprep.subr.bf16.mxu0 %v6275_v31  ;;  %4602 = vmatpush1.bf16.msra.mxu1 %v6288_v32  ;;  %v6343_v31 = vld [vmem:[#allocation10 + $0x874] ss:$12 sps:$4 sm:$0xff]   ;;  %v424_v32 = vrot.slane %v6753_v55, %v6670_v25 }
 0x1f5   :  { %4603 = vmatprep.subr.bf16.mxu1 %v6296_v36  ;;  %v6321_v36 = vld [vmem:[#allocation10 + $0x6f0] ss:$12 sps:$4 sm:$0xff]  }
 0x1f7   :  { %4561 = vmatpush1.bf16.msra.mxu0 %v6273_v38 }
 0x1f8   :  { %4562 = vmatprep.subr.bf16.mxu0 %v6281_v39  ;;  %4604 = vmatpush1.bf16.msra.mxu1 %v6294_v41  ;;  %v6329_v39 = vld [vmem:[#allocation10 + $0x6dc] ss:$12 sps:$4 sm:$0xff]  }
 0x1f9   :  { %4605 = vmatprep.subr.bf16.mxu1 %v6302_v12  ;;  %v6341_v41 = vld [vmem:[#allocation10 + $0x870] ss:$12 sps:$4 sm:$0xff]  }
 0x1fa   :  { %v6348_v12 = vld [vmem:[#allocation10 + $0x85c] ss:$12 sps:$4 sm:$0xff]  }
 0x1fb   :  { %4563 = vmatpush1.bf16.msra.mxu0 %v6279_v37 }
 0x1fc   :  { %4564 = vmatprep.subr.bf16.mxu0 %v6287_v45  ;;  %4606 = vmatpush1.bf16.msra.mxu1 %v6300_v46  ;;  %v6327_v45 = vld [vmem:[#allocation10 + $0x6d8] ss:$12 sps:$4 sm:$0xff]  }
 0x1fd   :  { %4607 = vmatprep.subr.bf16.mxu1 %v6308_v47  ;;  %v6335_v47 = vld [vmem:[#allocation10 + $0x6c4] ss:$12 sps:$4 sm:$0xff]  }
 0x1ff   :  { %4565 = vmatpush1.bf16.msra.mxu0 %v6285_v48  ;;  %v6346_v48 = vld [vmem:[#allocation10 + $0x858] ss:$12 sps:$4 sm:$0xff]  }
 0x200   :  { %4566 = vmatprep.subr.bf16.mxu0 %v6293_v49  ;;  %4608 = vmatpush1.bf16.msra.mxu1 %v6306_v50  ;;  %v6353_v49 = vld [vmem:[#allocation10 + $0x844] ss:$12 sps:$4 sm:$0xff]  }
 0x201   :  { %4609 = vmatprep.subr.bf16.mxu1 %v6314_v51  ;;  %v6333_v51 = vld [vmem:[#allocation10 + $0x6c0] ss:$12 sps:$4 sm:$0xff]  }
 0x202   :  { %v2267_v60 = vpop.f32.mrf.mxu0 }
 0x203   :  { %4567 = vmatpush2.bf16.msra.mxu0 %v6291_v53  ;;  %v2268_v37 = vadd.f32 %v2267_v60, %v424_v32 }
 0x204   :  { %v2269_v61 = vpop.f32.mrf.mxu0  ;;  %4568 = vmatprep.subr.bf16.mxu0 %v6299_v56  ;;  %4610 = vmatpush2.bf16.msra.mxu1 %v6312_v43  ;;  %v6339_v56 = vld [vmem:[#allocation10 + $0x170] ss:$12 sps:$4 sm:$0xff]   ;;  %v6351_v43 = vld [vmem:[#allocation10 + $0x840] ss:$12 sps:$4 sm:$0xff]  }
 0x205   :  { %v2270_v44 = vadd.f32 %v2269_v61, %v428_v57  ;;  %4611 = vmatprep.subr.bf16.mxu1 %v6320_v59  ;;  %v2311_v50 = vadd.f32 %v6751_v52, %v2268_v37  ;;  %v436_v52 = vrot.slane %v6753_v55, %v403_v23  ;;  %v432_v61 = vrot.slane %v6753_v55, %v6704_v35  ;;  %v6365_v37 = vld [vmem:[#allocation10 + $0xe0] ss:$12 sps:$4 sm:$0xff]  }
 0x206   :  { %v2271_v13 = vpop.f32.mrf.mxu0 }
 0x207   :  { %4569 = vmatpush2.bf16.msra.mxu0 %v6297_v33  ;;  %v2313_v1 = vadd.f32 %v2312_v24, %v2270_v44  ;;  %v2272_v38 = vadd.f32 %v2271_v13, %v424_v32  ;;  %v2413_v59 = vmax.f32 %v2311_v50, 0.0  ;;  %v6340_v24 = vld [vmem:[#allocation10 + $0xb0] ss:$12 sps:$4 sm:$0xff]   ;;  %v6344_v33 = vld [vmem:[#allocation10 + $0x158] ss:$12 sps:$4 sm:$0xff]  }
 0x208   :  { %v2273_v6 = vpop.f32.mrf.mxu0  ;;  %4570 = vmatprep.subr.bf16.mxu0 %v6305_v2  ;;  %4612 = vmatpush2.bf16.msra.mxu1 %v6318_v7  ;;  %v6345_v44 = vld [vmem:[#allocation10 + $0x98] ss:$12 sps:$4 sm:$0xff]   ;;  %v6349_v13 = vld [vmem:[#allocation10 + $0x140] ss:$12 sps:$4 sm:$0xff]   ;;  %v6371_v50 = vld [vmem:[#allocation10 + $0x8] ss:$12 sps:$4 sm:$0xff]  }
 0x209   :  { %v2274_v10 = vadd.f32 %v2273_v6, %v428_v57  ;;  %4613 = vmatprep.subr.bf16.mxu1 %v6326_v3  ;;  %v2414_v19 = vmax.f32 %v2313_v1, 0.0  ;;  %v2315_v46 = vadd.f32 %v2314_v4, %v2272_v38  ;;  %v6356_v57 = vld [vmem:[#allocation10 + $0x2f0] ss:$12 sps:$4 sm:$0xff]   ;;  %v6354_v1 = vld [vmem:[#allocation10 + $0x128] ss:$12 sps:$4 sm:$0xff]  }
 0x20a   :  { %v6361_v38 = vld [vmem:[#allocation10 + $0xf8] ss:$12 sps:$4 sm:$0xff]  }
 0x20b   :  { %v2317_v15 = vadd.f32 %v2316_v14, %v2274_v10  ;;  %4571 = vmatpush2.bf16.msra.mxu0 %v6303_v5  ;;  %v2425_v53 = vmax.f32 %v2315_v46, 0.0  ;;  %v6367_v46 = vld [vmem:[#allocation10 + $0x20] ss:$12 sps:$4 sm:$0xff]  }
 0x20c   :  { %4572 = vmatprep.subr.bf16.mxu0 %v6311_v8  ;;  %4614 = vmatpush2.bf16.msra.mxu1 %v6324_v62  ;;  %v6350_v62 = vld [vmem:[#allocation10 + $0x80] ss:$12 sps:$4 sm:$0xff]  }
 0x20d   :  { %v2426_v21 = vmax.f32 %v2317_v15, 0.0  ;;  %4615 = vmatprep.subr.bf16.mxu1 %v6332_v11  ;;  %v6763_v60 = vpack.c.bf16 %v2425_v53, %v2413_v59  ;;  %v6373_v53 = vld [vmem:[#allocation10 + $0x1d0] ss:$12 sps:$4 sm:$0xff]   ;;  %v6377_v59 = vld [vmem:[#allocation10 + $0x1b8] ss:$12 sps:$4 sm:$0xff]  }
 0x20f   :  { %4573 = vmatpush2.bf16.msra.mxu0 %v6309_v16  ;;  %v6757_v26 = vpack.c.bf16 %v2426_v21, %v2414_v19  ;;  %v6357_v19 = vld [vmem:[#allocation10 + $0x110] ss:$12 sps:$4 sm:$0xff]  }
 0x210   :  { %4574 = vmatprep.subr.bf16.mxu0 %v6317_v17  ;;  %4616 = vmatpush2.bf16.msra.mxu1 %v6330_v18  ;;  %v6355_v17 = vld [vmem:[#allocation10 + $0x68] ss:$12 sps:$4 sm:$0xff]  }
 0x211   :  { %4582 = vmatprep.mubr.bf16.mxu0 %v6757_v26  ;;  %4617 = vmatprep.subr.bf16.mxu1 %v6338_v22 }
 0x213   :  { %4575 = vmatpush2.bf16.msra.mxu0 %v6315_v27 }
 0x214   :  { %4576 = vmatprep.subr.bf16.mxu0 %v6323_v28  ;;  %4618 = vmatpush2.bf16.msra.mxu1 %v6336_v30  ;;  %v6358_v30 = vld [vmem:[#allocation10 + $0x230] ss:$12 sps:$4 sm:$0xff]  }
 0x215   :  { %4619 = vmatprep.subr.bf16.mxu1 %v6343_v31  ;;  %v6359_v31 = vld [vmem:[#allocation10 + $0x50] ss:$12 sps:$4 sm:$0xff]  }
 0x217   :  { %4577 = vmatpush2.bf16.msra.mxu0 %v6321_v36  ;;  %v6360_v36 = vld [vmem:[#allocation10 + $0x2d8] ss:$12 sps:$4 sm:$0xff]  }
 0x218   :  { %4578 = vmatprep.subr.bf16.mxu0 %v6329_v39  ;;  %4620 = vmatpush2.bf16.msra.mxu1 %v6341_v41  ;;  %v6362_v39 = vld [vmem:[#allocation10 + $0x218] ss:$12 sps:$4 sm:$0xff]  }
 0x219   :  { %4621 = vmatprep.subr.bf16.mxu1 %v6348_v12  ;;  %v6363_v41 = vld [vmem:[#allocation10 + $0x38] ss:$12 sps:$4 sm:$0xff]   ;;  %v6364_v12 = vld [vmem:[#allocation10 + $0x2c0] ss:$12 sps:$4 sm:$0xff]  }
 0x21b   :  { %4579 = vmatpush2.bf16.msra.mxu0 %v6327_v45  ;;  %v6366_v45 = vld [vmem:[#allocation10 + $0x200] ss:$12 sps:$4 sm:$0xff]  }
 0x21c   :  { %4580 = vmatprep.subr.bf16.mxu0 %v6335_v47  ;;  %4622 = vmatpush2.bf16.msra.mxu1 %v6346_v48  ;;  %v6368_v47 = vld [vmem:[#allocation10 + $0x2a8] ss:$12 sps:$4 sm:$0xff]  }
 0x21d   :  { %4623 = vmatprep.subr.bf16.mxu1 %v6353_v49  ;;  %v6369_v48 = vld [vmem:[#allocation10 + $0xc8] ss:$12 sps:$4 sm:$0xff]  }
 0x21e   :  { %v6370_v49 = vld [vmem:[#allocation10 + $0x1e8] ss:$12 sps:$4 sm:$0xff]  }
 0x21f   :  { %4581 = vmatpush2.bf16.msra.mxu0 %v6333_v51  ;;  %v6372_v51 = vld [vmem:[#allocation10 + $0x290] ss:$12 sps:$4 sm:$0xff]  }
 0x220   :  { %5483 = vmatprep.subr.bf16.mxu0 %v6339_v56  ;;  %4624 = vmatpush2.bf16.msra.mxu1 %v6351_v43  ;;  %v6375_v56 = vld [vmem:[#allocation10 + $0x3b0] ss:$12 sps:$4 sm:$0xff]   ;;  %v6376_v43 = vld [vmem:[#allocation10 + $0x278] ss:$12 sps:$4 sm:$0xff]  }
 0x221   :  { %5505 = vmatprep.subr.bf16.mxu1 %v6356_v57  ;;  %v6378_v57 = vld [vmem:[#allocation10 + $0x458] ss:$12 sps:$4 sm:$0xff]  }
 0x222   :  { %v2396_v7 = vpop.f32.mrf.mxu0  ;;  %4583 = vmatmul.mubr.bf16.vlgmr.msra.gmra.mxu0 %v6763_v60 }
 0x223   :  { %v2353_v2 = vpop.f32.mrf.mxu1  ;;  %5484 = vmatpush3.bf16.msra.mxu0 %v6340_v24  ;;  %4668 = vmatprep.mubr.bf16.mxu0 %v6684_v29  ;;  %v6379_v24 = vld [vmem:[#allocation10 + $0x398] ss:$12 sps:$4 sm:$0xff]  }
 0x224   :  { %v2398_v4 = vpop.f32.mrf.mxu0  ;;  %5485 = vmatprep.subr.bf16.mxu0 %v6344_v33  ;;  %v2354_v20 = vadd.f32 %v2353_v2, %v432_v61  ;;  %v6380_v33 = vld [vmem:[#allocation10 + $0x260] ss:$12 sps:$4 sm:$0xff]  }
 0x225   :  { %v2355_v3 = vpop.f32.mrf.mxu1  ;;  %v6383_v2 = vld [vmem:[#allocation10 + $0x380] ss:$12 sps:$4 sm:$0xff]  }
 0x226   :  { %v2356_v5 = vadd.f32 %v2355_v3, %v436_v52  ;;  %v2400_v23 = vpop.f32.mrf.mxu0  ;;  %v2397_v15 = vadd.f32 %v2396_v7, %v2354_v20  ;;  %v6384_v7 = vld [vmem:[#allocation10 + $0x248] ss:$12 sps:$4 sm:$0xff]   ;;  %v6392_v20 = vld [vmem:[#allocation10 + $0x5d8] ss:$12 sps:$4 sm:$0xff]  }
 0x227   :  { %v2357_v6 = vpop.f32.mrf.mxu1  ;;  %5486 = vmatpush3.bf16.msra.mxu0 %v6345_v44  ;;  %v6386_v44 = vld [vmem:[#allocation10 + $0x428] ss:$12 sps:$4 sm:$0xff]  }
 0x228   :  { %v2358_v8 = vadd.f32 %v2357_v6, %v432_v61  ;;  %5487 = vmatprep.subr.bf16.mxu0 %v6349_v13  ;;  %v2399_v10 = vadd.f32 %v2398_v4, %v2356_v5  ;;  %v2402_v29 = vpop.f32.mrf.mxu0  ;;  %v2415_v27 = vmax.f32 %v2397_v15, 0.0  ;;  %v6381_v61 = vld [vmem:[#allocation10 + $0x1a0] ss:$12 sps:$4 sm:$0xff]   ;;  %v6387_v3 = vld [vmem:[#allocation10 + $0x368] ss:$12 sps:$4 sm:$0xff]  }
 0x229   :  { %v2359_v55 = vpop.f32.mrf.mxu1  ;;  %v6388_v4 = vld [vmem:[#allocation10 + $0x5f0] ss:$12 sps:$4 sm:$0xff]   ;;  %v6393_v6 = vld [vmem:[#allocation10 + $0x3f8] ss:$12 sps:$4 sm:$0xff]  }
 0x22a   :  { %v2401_v11 = vadd.f32 %v2400_v23, %v2358_v8  ;;  %v2360_v14 = vadd.f32 %v2359_v55, %v436_v52  ;;  %v2416_v21 = vmax.f32 %v2399_v10, 0.0  ;;  %v6382_v52 = vld [vmem:[#allocation10 + $0x440] ss:$12 sps:$4 sm:$0xff]   ;;  %v6390_v13 = vld [vmem:[#allocation10 + $0x530] ss:$12 sps:$4 sm:$0xff]  }
 0x22b   :  { %5488 = vmatpush3.bf16.msra.mxu0 %v6350_v62  ;;  %v6391_v5 = vld [vmem:[#allocation10 + $0x350] ss:$12 sps:$4 sm:$0xff]   ;;  %v6394_v23 = vld [vmem:[#allocation10 + $0x518] ss:$12 sps:$4 sm:$0xff]   ;;  %v6396_v62 = vld [vmem:[#allocation10 + $0x5c0] ss:$12 sps:$4 sm:$0xff]  }
 0x22c   :  { %v2403_v16 = vadd.f32 %v2402_v29, %v2360_v14  ;;  %v2427_v18 = vmax.f32 %v2401_v11, 0.0  ;;  %5489 = vmatprep.subr.bf16.mxu0 %v6354_v1  ;;  %v6395_v8 = vld [vmem:[#allocation10 + $0x338] ss:$12 sps:$4 sm:$0xff]   ;;  %v6397_v55 = vld [vmem:[#allocation10 + $0x3e0] ss:$12 sps:$4 sm:$0xff]  }
 0x22d   :  { %v6398_v1 = vld [vmem:[#allocation10 + $0x500] ss:$12 sps:$4 sm:$0xff]   ;;  %v6400_v11 = vld [vmem:[#allocation10 + $0x5a8] ss:$12 sps:$4 sm:$0xff]   ;;  %v6404_v15 = vld [vmem:[#allocation10 + $0x590] ss:$12 sps:$4 sm:$0xff]  }
 0x22e   :  { %v2428_v22 = vmax.f32 %v2403_v16, 0.0  ;;  %v6774_v32 = vpack.c.bf16 %v2427_v18, %v2415_v27  ;;  %v6399_v10 = vld [vmem:[#allocation10 + $0x320] ss:$12 sps:$4 sm:$0xff]   ;;  %v6401_v14 = vld [vmem:[#allocation10 + $0x3c8] ss:$12 sps:$4 sm:$0xff]  }
 0x22f   :  { %5490 = vmatpush3.bf16.msra.mxu0 %v6355_v17  ;;  %v6406_v29 = vld [vmem:[#allocation10 + $0x770] ss:$12 sps:$4 sm:$0xff]   ;;  %v6408_v18 = vld [vmem:[#allocation10 + $0x578] ss:$12 sps:$4 sm:$0xff]   ;;  %v6412_v27 = vld [vmem:[#allocation10 + $0x560] ss:$12 sps:$4 sm:$0xff]  }
 0x230   :  { %v6772_v28 = vpack.c.bf16 %v2428_v22, %v2416_v21  ;;  %5491 = vmatprep.subr.bf16.mxu0 %v6357_v19  ;;  %v6405_v16 = vld [vmem:[#allocation10 + $0x4d0] ss:$12 sps:$4 sm:$0xff]   ;;  %v6410_v19 = vld [vmem:[#allocation10 + $0x758] ss:$12 sps:$4 sm:$0xff]  }
 0x231   :  { %v6407_v17 = vld [vmem:[#allocation10 + $0x6b0] ss:$12 sps:$4 sm:$0xff]   ;;  %v6409_v21 = vld [vmem:[#allocation10 + $0x4b8] ss:$12 sps:$4 sm:$0xff]  }
 0x232   :  { %4625 = vmatprep.mubr.bf16.mxu1 %v6772_v28  ;;  %v6411_v22 = vld [vmem:[#allocation10 + $0x698] ss:$12 sps:$4 sm:$0xff]  }
 0x233   :  { %4626 = vmatmul.mubr.bf16.vlgmr.msra.gmra.mxu1 %v6774_v32  ;;  %5492 = vmatpush3.bf16.msra.mxu0 %v6359_v31  ;;  %v6413_v31 = vld [vmem:[#allocation10 + $0x4a0] ss:$12 sps:$4 sm:$0xff]  }
 0x234   :  { %5506 = vmatpush3.bf16.msra.mxu1 %v6358_v30  ;;  %4709 = vmatprep.mubr.bf16.mxu1 %v6700_v58  ;;  %v6374_v58 = vld [vmem:[#allocation10 + $0x470] ss:$12 sps:$4 sm:$0xff]   ;;  %v6414_v30 = vld [vmem:[#allocation10 + $0x740] ss:$12 sps:$4 sm:$0xff]  }
 0x235   :  { %5507 = vmatprep.subr.bf16.mxu1 %v6360_v36  ;;  %5493 = vmatprep.subr.bf16.mxu0 %v6361_v38  ;;  %v6415_v36 = vld [vmem:[#allocation10 + $0x680] ss:$12 sps:$4 sm:$0xff]   ;;  %v6416_v38 = vld [vmem:[#allocation10 + $0x548] ss:$12 sps:$4 sm:$0xff]  }
 0x237   :  { %5494 = vmatpush3.bf16.msra.mxu0 %v6363_v41  ;;  %v6419_v41 = vld [vmem:[#allocation10 + $0x668] ss:$12 sps:$4 sm:$0xff]  }
 0x238   :  { %5508 = vmatpush3.bf16.msra.mxu1 %v6362_v39  ;;  %5495 = vmatprep.subr.bf16.mxu0 %v6365_v37  ;;  %v6418_v39 = vld [vmem:[#allocation10 + $0x728] ss:$12 sps:$4 sm:$0xff]   ;;  %v6422_v37 = vld [vmem:[#allocation10 + $0x830] ss:$12 sps:$4 sm:$0xff]  }
 0x239   :  { %5509 = vmatprep.subr.bf16.mxu1 %v6364_v12  ;;  %v6420_v12 = vld [vmem:[#allocation10 + $0x8f0] ss:$12 sps:$4 sm:$0xff]  }
 0x23b   :  { %5496 = vmatpush3.bf16.msra.mxu0 %v6367_v46  ;;  %v6424_v46 = vld [vmem:[#allocation10 + $0x8d8] ss:$12 sps:$4 sm:$0xff]  }
 0x23c   :  { %5510 = vmatpush3.bf16.msra.mxu1 %v6366_v45  ;;  %5497 = vmatprep.subr.bf16.mxu0 %v6369_v48  ;;  %v6423_v45 = vld [vmem:[#allocation10 + $0x650] ss:$12 sps:$4 sm:$0xff]   ;;  %v6426_v48 = vld [vmem:[#allocation10 + $0x818] ss:$12 sps:$4 sm:$0xff]  }
 0x23d   :  { %5511 = vmatprep.subr.bf16.mxu1 %v6368_v47  ;;  %v6425_v47 = vld [vmem:[#allocation10 + $0x6f8] ss:$12 sps:$4 sm:$0xff]  }
 0x23f   :  { %5498 = vmatpush3.bf16.msra.mxu0 %v6371_v50  ;;  %v6428_v50 = vld [vmem:[#allocation10 + $0x8c0] ss:$12 sps:$4 sm:$0xff]  }
 0x240   :  { %5512 = vmatpush3.bf16.msra.mxu1 %v6370_v49  ;;  %5527 = vmatprep.subr.bf16.mxu0 %v6374_v58  ;;  %v6427_v49 = vld [vmem:[#allocation10 + $0x638] ss:$12 sps:$4 sm:$0xff]   ;;  %v6430_v58 = vld [vmem:[#allocation10 + $0x800] ss:$12 sps:$4 sm:$0xff]  }
 0x241   :  { %5513 = vmatprep.subr.bf16.mxu1 %v6372_v51  ;;  %v6429_v51 = vld [vmem:[#allocation10 + $0x6e0] ss:$12 sps:$4 sm:$0xff]  }
 0x242   :  { %4669 = vmatmul.mubr.bf16.vlgmr.msra.gmra.mxu0 %v6676_v0  ;;  %v6385_v0 = vld [vmem:[#allocation10 + $0x188] ss:$12 sps:$4 sm:$0xff]  }
 0x243   :  { %5528 = vmatpush3.bf16.msra.mxu0 %v6375_v56  ;;  %4750 = vmatprep.mubr.bf16.mxu0 %v6726_v40  ;;  %v6389_v40 = vld [vmem:[#allocation10 + $0x410] ss:$12 sps:$4 sm:$0xff]   ;;  %v6432_v56 = vld [vmem:[#allocation10 + $0x8a8] ss:$12 sps:$4 sm:$0xff]  }
 0x244   :  { %5514 = vmatpush3.bf16.msra.mxu1 %v6373_v53  ;;  %5529 = vmatprep.subr.bf16.mxu0 %v6378_v57  ;;  %v6431_v53 = vld [vmem:[#allocation10 + $0x620] ss:$12 sps:$4 sm:$0xff]   ;;  %v6436_v57 = vld [vmem:[#allocation10 + $0x890] ss:$12 sps:$4 sm:$0xff]  }
 0x245   :  { %5515 = vmatprep.subr.bf16.mxu1 %v6376_v43  ;;  %v6433_v43 = vld [vmem:[#allocation10 + $0x6c8] ss:$12 sps:$4 sm:$0xff]  }
 0x247   :  { %5530 = vmatpush3.bf16.msra.mxu0 %v6379_v24  ;;  %v6438_v24 = vld [vmem:[#allocation10 + $0x878] ss:$12 sps:$4 sm:$0xff]  }
 0x248   :  { %5516 = vmatpush3.bf16.msra.mxu1 %v6377_v59  ;;  %5531 = vmatprep.subr.bf16.mxu0 %v6382_v52  ;;  %v6437_v59 = vld [vmem:[#allocation10 + $0x7d0] ss:$12 sps:$4 sm:$0xff]   ;;  %v6440_v52 = vld [vmem:[#allocation10 + $0x860] ss:$12 sps:$4 sm:$0xff]  }
 0x249   :  { %5517 = vmatprep.subr.bf16.mxu1 %v6380_v33  ;;  %v6439_v33 = vld [vmem:[#allocation10 + $0x7b8] ss:$12 sps:$4 sm:$0xff]  }
 0x24b   :  { %5532 = vmatpush3.bf16.msra.mxu0 %v6383_v2  ;;  %v6442_v2 = vld [vmem:[#allocation10 + $0x848] ss:$12 sps:$4 sm:$0xff]  }
 0x24c   :  { %5518 = vmatpush3.bf16.msra.mxu1 %v6381_v61  ;;  %5533 = vmatprep.subr.bf16.mxu0 %v6386_v44  ;;  %v6441_v61 = vld [vmem:[#allocation10 + $0x7a0] ss:$12 sps:$4 sm:$0xff]  }
 0x24d   :  { %5519 = vmatprep.subr.bf16.mxu1 %v6384_v7  ;;  %v6443_v7 = vld [vmem:[#allocation10 + $0x788] ss:$12 sps:$4 sm:$0xff]  }
 0x24f   :  { %5534 = vmatpush3.bf16.msra.mxu0 %v6387_v3 }
 0x250   :  { %5520 = vmatpush3.bf16.msra.mxu1 %v6385_v0  ;;  %5535 = vmatprep.subr.bf16.mxu0 %v6389_v40 }
 0x251   :  { %5549 = vmatprep.subr.bf16.mxu1 %v6388_v4 }
 0x253   :  { %4710 = vmatmul.mubr.bf16.vlgmr.msra.gmra.mxu1 %v6715_v34  ;;  %5536 = vmatpush3.bf16.msra.mxu0 %v6391_v5  ;;  %v6402_v34 = vld [vmem:[#allocation10 + $0x4e8] ss:$12 sps:$4 sm:$0xff]   ;;  %v6789_v5 = vld [vmem:[#allocation12] sm:$0x7] }
 0x254   :  { %5550 = vmatpush3.bf16.msra.mxu1 %v6390_v13  ;;  %4791 = vmatprep.mubr.bf16.mxu1 %v6736_v42  ;;  %v6403_v42 = vld [vmem:[#allocation10 + $0x308] ss:$12 sps:$4 sm:$0xff]  }
 0x255   :  { %5551 = vmatprep.subr.bf16.mxu1 %v6392_v20  ;;  %5537 = vmatprep.subr.bf16.mxu0 %v6393_v6 }
 0x257   :  { %5538 = vmatpush3.bf16.msra.mxu0 %v6395_v8 }
 0x258   :  { %5552 = vmatpush3.bf16.msra.mxu1 %v6394_v23  ;;  %5539 = vmatprep.subr.bf16.mxu0 %v6397_v55  ;;  %v2830_v23 = vrot.slane %v6789_v5, %v6670_v25  ;;  %v2834_v55 = vrot.slane %v6789_v5, %v6679_v63 }
 0x259   :  { %5553 = vmatprep.subr.bf16.mxu1 %v6396_v62 }
 0x25b   :  { %5540 = vmatpush3.bf16.msra.mxu0 %v6399_v10 }
 0x25c   :  { %5554 = vmatpush3.bf16.msra.mxu1 %v6398_v1  ;;  %5541 = vmatprep.subr.bf16.mxu0 %v6401_v14 }
 0x25d   :  { %5555 = vmatprep.subr.bf16.mxu1 %v6400_v11 }
 0x25f   :  { %5542 = vmatpush3.bf16.msra.mxu0 %v6403_v42 }
 0x260   :  { %5556 = vmatpush3.bf16.msra.mxu1 %v6402_v34  ;;  %5571 = vmatprep.subr.bf16.mxu0 %v6406_v29 }
 0x261   :  { %5557 = vmatprep.subr.bf16.mxu1 %v6404_v15 }
 0x262   :  { %4751 = vmatmul.mubr.bf16.vlgmr.msra.gmra.mxu0 %v6745_v54  ;;  %v6417_v54 = vld [vmem:[#allocation10 + $0x488] ss:$12 sps:$4 sm:$0xff]   ;;  %v4412_v44 = vpop.f32.mrf.mxu0 }
 0x263   :  { %5572 = vmatpush3.bf16.msra.mxu0 %v6407_v17  ;;  %4832 = vmatprep.mubr.bf16.mxu0 %v6757_v26  ;;  %v6421_v26 = vld [vmem:[#allocation10 + $0x710] ss:$12 sps:$4 sm:$0xff]   ;;  %v4455_v4 = vpop.f32.mrf.mxu1  ;;  %v4413_v1 = vadd.f32 %v4412_v44, %v2830_v23 }
 0x264   :  { %5558 = vmatpush3.bf16.msra.mxu1 %v6405_v16  ;;  %5573 = vmatprep.subr.bf16.mxu0 %v6410_v19  ;;  %v4414_v0 = vpop.f32.mrf.mxu0 }
 0x265   :  { %5559 = vmatprep.subr.bf16.mxu1 %v6408_v18  ;;  %v4415_v11 = vadd.f32 %v4414_v0, %v2834_v55  ;;  %v4456_v42 = vadd.f32 %v4455_v4, %v4413_v1  ;;  %v2838_v4 = vrot.slane %v6789_v5, %v6704_v35 }
 0x266   :  { %v4416_v3 = vpop.f32.mrf.mxu0 }
 0x267   :  { %5574 = vmatpush3.bf16.msra.mxu0 %v6411_v22  ;;  %v4417_v15 = vadd.f32 %v4416_v3, %v2830_v23 }
 0x268   :  { %5560 = vmatpush3.bf16.msra.mxu1 %v6409_v21  ;;  %5575 = vmatprep.subr.bf16.mxu0 %v6414_v30  ;;  %v4418_v40 = vpop.f32.mrf.mxu0 }
 0x269   :  { %5561 = vmatprep.subr.bf16.mxu1 %v6412_v27  ;;  %v4419_v16 = vadd.f32 %v4418_v40, %v2834_v55 }
 0x26b   :  { %5576 = vmatpush3.bf16.msra.mxu0 %v6415_v36 }
 0x26c   :  { %5562 = vmatpush3.bf16.msra.mxu1 %v6413_v31  ;;  %5577 = vmatprep.subr.bf16.mxu0 %v6418_v39 }
 0x26d   :  { %5563 = vmatprep.subr.bf16.mxu1 %v6416_v38 }
 0x26f   :  { %5578 = vmatpush3.bf16.msra.mxu0 %v6419_v41 }
 0x270   :  { %5564 = vmatpush3.bf16.msra.mxu1 %v6417_v54  ;;  %5579 = vmatprep.subr.bf16.mxu0 %v6421_v26 }
 0x271   :  { %5593 = vmatprep.subr.bf16.mxu1 %v6420_v12 }
 0x273   :  { %4792 = vmatmul.mubr.bf16.vlgmr.msra.gmra.mxu1 %v6747_v9  ;;  %5580 = vmatpush3.bf16.msra.mxu0 %v6423_v45  ;;  %v6434_v9 = vld [vmem:[#allocation10 + $0x7e8] ss:$12 sps:$4 sm:$0xff]  }
 0x274   :  { %5594 = vmatpush3.bf16.msra.mxu1 %v6422_v37  ;;  %4873 = vmatprep.mubr.bf16.mxu1 %v6772_v28  ;;  %v6435_v28 = vld [vmem:[#allocation10 + $0x608] ss:$12 sps:$4 sm:$0xff]  }
 0x275   :  { %5595 = vmatprep.subr.bf16.mxu1 %v6424_v46  ;;  %5581 = vmatprep.subr.bf16.mxu0 %v6425_v47 }
 0x277   :  { %5582 = vmatpush3.bf16.msra.mxu0 %v6427_v49 }
 0x278   :  { %5596 = vmatpush3.bf16.msra.mxu1 %v6426_v48  ;;  %5583 = vmatprep.subr.bf16.mxu0 %v6429_v51 }
 0x279   :  { %5597 = vmatprep.subr.bf16.mxu1 %v6428_v50 }
 0x27b   :  { %5584 = vmatpush3.bf16.msra.mxu0 %v6431_v53 }
 0x27c   :  { %5598 = vmatpush3.bf16.msra.mxu1 %v6430_v58  ;;  %5585 = vmatprep.subr.bf16.mxu0 %v6433_v43 }
 0x27d   :  { %5599 = vmatprep.subr.bf16.mxu1 %v6432_v56 }
 0x27f   :  { %5586 = vmatpush3.bf16.msra.mxu0 %v6435_v28 }
 0x280   :  { %5600 = vmatpush3.bf16.msra.mxu1 %v6434_v9 }
 0x281   :  { %5601 = vmatprep.subr.bf16.mxu1 %v6436_v57 }
 0x282   :  { %4833 = vmatmul.mubr.bf16.vlgmr.msra.gmra.mxu0 %v6763_v60  ;;  %v4457_v60 = vpop.f32.mrf.mxu1 }
 0x283   :  { %v4458_v29 = vadd.f32 %v4457_v60, %v4415_v11 }
 0x284   :  { %5602 = vmatpush3.bf16.msra.mxu1 %v6437_v59  ;;  %v4459_v20 = vpop.f32.mrf.mxu1 }
 0x285   :  { %5603 = vmatprep.subr.bf16.mxu1 %v6438_v24  ;;  %v4460_v21 = vadd.f32 %v4459_v20, %v4417_v15 }
 0x286   :  { %v4461_v8 = vpop.f32.mrf.mxu1 }
 0x287   :  { %v4462_v22 = vadd.f32 %v4461_v8, %v4419_v16 }
 0x288   :  { %5604 = vmatpush3.bf16.msra.mxu1 %v6439_v33 }
 0x289   :  { %5605 = vmatprep.subr.bf16.mxu1 %v6440_v52 }
 0x28c   :  { %5606 = vmatpush3.bf16.msra.mxu1 %v6441_v61 }
 0x28d   :  { %5607 = vmatprep.subr.bf16.mxu1 %v6442_v2 }
 0x290   :  { %5608 = vmatpush3.bf16.msra.mxu1 %v6443_v7 }
 0x293   :  { %4874 = vmatmul.mubr.bf16.vlgmr.msra.gmra.mxu1 %v6774_v32 }
 0x2a2   :  { %v4498_v13 = vpop.f32.mrf.mxu0 }
 0x2a3   :  { %v4541_v32 = vpop.f32.mrf.mxu1  ;;  %v4499_v17 = vadd.f32 %v4498_v13, %v4456_v42 }
 0x2a4   :  { %v4500_v6 = vpop.f32.mrf.mxu0 }
 0x2a5   :  { %v4543_v14 = vpop.f32.mrf.mxu1  ;;  %v4501_v25 = vadd.f32 %v4500_v6, %v4458_v29  ;;  %v4542_v27 = vadd.f32 %v4541_v32, %v4499_v17 }
 0x2a6   :  { %v4502_v62 = vpop.f32.mrf.mxu0 }
 0x2a7   :  { %v4545_v18 = vpop.f32.mrf.mxu1  ;;  %v4503_v30 = vadd.f32 %v4502_v62, %v4460_v21  ;;  %v4544_v36 = vadd.f32 %v4543_v14, %v4501_v25 }
 0x2a8   :  { %v4504_v10 = vpop.f32.mrf.mxu0 }
 0x2a9   :  { %v4547_v31 = vpop.f32.mrf.mxu1  ;;  %v4505_v38 = vadd.f32 %v4504_v10, %v4462_v22  ;;  %v4546_v41 = vadd.f32 %v4545_v18, %v4503_v30 }
 0x2ab   :  { %v4548_v46 = vadd.f32 %v4547_v31, %v4505_v38 }
 0x2e2   :  { %v4584_v34 = vpop.f32.mrf.mxu0 }
 0x2e3   :  { %v4585_v39 = vadd.f32 %v4584_v34, %v4542_v27 }
 0x2e4   :  { %v4586_v19 = vpop.f32.mrf.mxu0 }
 0x2e5   :  { %v4587_v12 = vadd.f32 %v4586_v19, %v4544_v36 }
 0x2e6   :  { %v4588_v63 = vpop.f32.mrf.mxu0 }
 0x2e7   :  { %v4589_v47 = vadd.f32 %v4588_v63, %v4546_v41 }
 0x2e8   :  { %v4590_v37 = vpop.f32.mrf.mxu0 }
 0x2e9   :  { %v4591_v50 = vadd.f32 %v4590_v37, %v4548_v46 }
 0x2f3   :  { %v4627_v54 = vpop.f32.mrf.mxu1 }
 0x2f4   :  { %v4628_v26 = vadd.f32 %v4627_v54, %v4585_v39 }
 0x2f5   :  { %v4629_v45 = vpop.f32.mrf.mxu1 }
 0x2f6   :  { %4882 = vst [vmem:[#allocation13] sm:$0xff] %v4628_v26  ;;  %v4630_v48 = vadd.f32 %v4629_v45, %v4587_v12 }
 0x2f7   :  { %v4631_v49 = vpop.f32.mrf.mxu1 }
 0x2f8   :  { %4883 = vst [vmem:[#allocation13 + $0x8] sm:$0xff] %v4630_v48  ;;  %v4632_v51 = vadd.f32 %v4631_v49, %v4589_v47 }
 0x2f9   :  { %v4633_v58 = vpop.f32.mrf.mxu1 }
 0x2fa   :  { %4885 = vst [vmem:[#allocation13 + $0x18] sm:$0xff] %v4632_v51  ;;  %v4634_v53 = vadd.f32 %v4633_v58, %v4591_v50 }
 0x2fc   :  { %4886 = vst [vmem:[#allocation13 + $0x20] sm:$0xff] %v4634_v53 }
 0x302   :  { %v5499_v56 = vpop.f32.mrf.mxu0 }
 0x304   :  { %v5500_v43 = vpop.f32.mrf.mxu0 }
 0x305   :  { %v5501_v40 = vadd.f32 %v5500_v43, %v5499_v56 }
 0x306   :  { %v5502_v9 = vpop.f32.mrf.mxu0 }
 0x307   :  { %v4671_v6 = vadd.f32 %v5501_v40, %v2838_v4 }
 0x308   :  { %v5503_v28 = vpop.f32.mrf.mxu0 }
 0x309   :  { %v5504_v23 = vadd.f32 %v5503_v28, %v5502_v9 }
 0x30b   :  { %v4674_v11 = vadd.f32 %v5504_v23, %v2838_v4 }
 0x313   :  { %v5521_v57 = vpop.f32.mrf.mxu1 }
 0x315   :  { %v5522_v24 = vpop.f32.mrf.mxu1 }
 0x316   :  { %v5523_v13 = vadd.f32 %v5522_v24, %v5521_v57 }
 0x317   :  { %v5524_v52 = vpop.f32.mrf.mxu1 }
 0x318   :  { %v4712_v55 = vadd.f32 %v5523_v13, %v4671_v6 }
 0x319   :  { %v5525_v2 = vpop.f32.mrf.mxu1 }
 0x31a   :  { %v5526_v32 = vadd.f32 %v5525_v2, %v5524_v52 }
 0x31c   :  { %v4715_v16 = vadd.f32 %v5526_v32, %v4674_v11 }
 0x322   :  { %v5543_v59 = vpop.f32.mrf.mxu0 }
 0x324   :  { %v5544_v33 = vpop.f32.mrf.mxu0 }
 0x325   :  { %v5545_v8 = vadd.f32 %v5544_v33, %v5543_v59 }
 0x326   :  { %v5546_v61 = vpop.f32.mrf.mxu0 }
 0x327   :  { %v4753_v14 = vadd.f32 %v5545_v8, %v4712_v55 }
 0x328   :  { %v5547_v7 = vpop.f32.mrf.mxu0 }
 0x329   :  { %v5548_v34 = vadd.f32 %v5547_v7, %v5546_v61 }
 0x32b   :  { %v4756_v18 = vadd.f32 %v5548_v34, %v4715_v16 }
 0x333   :  { %v5565_v44 = vpop.f32.mrf.mxu1 }
 0x335   :  { %v5566_v3 = vpop.f32.mrf.mxu1 }
 0x336   :  { %v5567_v1 = vadd.f32 %v5566_v3, %v5565_v44 }
 0x337   :  { %v5568_v20 = vpop.f32.mrf.mxu1 }
 0x338   :  { %v4794_v35 = vadd.f32 %v5567_v1, %v4753_v14 }
 0x339   :  { %v5569_v10 = vpop.f32.mrf.mxu1 }
 0x33a   :  { %v5570_v5 = vadd.f32 %v5569_v10, %v5568_v20 }
 0x33c   :  { %v4797_v27 = vadd.f32 %v5570_v5, %v4756_v18 }
 0x342   :  { %v5587_v0 = vpop.f32.mrf.mxu0 }
 0x344   :  { %v5588_v60 = vpop.f32.mrf.mxu0 }
 0x345   :  { %v5589_v42 = vadd.f32 %v5588_v60, %v5587_v0 }
 0x346   :  { %v5590_v62 = vpop.f32.mrf.mxu0 }
 0x347   :  { %v4835_v19 = vadd.f32 %v5589_v42, %v4794_v35 }
 0x348   :  { %v5591_v15 = vpop.f32.mrf.mxu0 }
 0x349   :  { %v5592_v21 = vadd.f32 %v5591_v15, %v5590_v62 }
 0x34b   :  { %v4838_v63 = vadd.f32 %v5592_v21, %v4797_v27 }
 0x353   :  { %v5609_v29 = vpop.f32.mrf.mxu1 }
 0x355   :  { %v5610_v17 = vpop.f32.mrf.mxu1 }
 0x356   :  { %v5611_v25 = vadd.f32 %v5610_v17, %v5609_v29 }
 0x357   :  { %v5612_v22 = vpop.f32.mrf.mxu1 }
 0x358   :  { %v4876_v30 = vadd.f32 %v5611_v25, %v4835_v19 }
 0x359   :  { %v5613_v31 = vpop.f32.mrf.mxu1 }
 0x35a   :  { %4884 = vst [vmem:[#allocation13 + $0x10] sm:$0xff] %v4876_v30  ;;  %v5614_v36 = vadd.f32 %v5613_v31, %v5612_v22 }
 0x35c   :  { %v4879_v38 = vadd.f32 %v5614_v36, %v4838_v63 }
 0x35e   :  { %4887 = vst [vmem:[#allocation13 + $0x28] sm:$0xff] %v4879_v38 }
 0x35f   :  { %6556 = shalt.err (!%p6553_p1)
}
 0x360   :  { %4899 = dma.vmem_to_hbm [thread:$0]  %s4894_s5, 768, %s6809_s6, [#allocation6], %s6580_s12, %s6580_s12, %s6581_s13  }
 0x361   :  { %6571 = dma.done.wait [#allocation6], 768  }
 0x362   :  { %6572 = vsyncadd [#allocation6], 4294966528 }
 0x363   :  { %4903 = vsyncpa [#allocation5], 1 }
 0x364   :  { %4904 = vsyncpa [#allocation8], 1 }
 0x365   :  { %4905 = vsyncpa [#allocation11], 1 }
 0x366   :  { %4906 = vsyncpa [#allocation6], 1 }

</bundles_post_ra>
